<compile_context>
chip_gen: v5e
topology: v5e:2x2
jax: 0.10.0
libtpu: 0.0.40
codegen_flags: <defaults>
</compile_context>

<pallas_src>
import math
import functools

import jax
import jax.numpy as jnp
from jax.experimental import pallas as pl
from jax.experimental.pallas import tpu as pltpu


# ---------------------------------------------------------------------------
# Kernel: grid = (B, L-tiles, S-tiles); S axis is the online-softmax reduction
# ---------------------------------------------------------------------------
def _flash_attention_layer_kernel(
    q_ref, k_ref, v_ref,            # (tL, d_model) f32 / (tS, d_model) f32 (batch dim squeezed)
    wq_ref, bq_ref,                 # (d_model, H*E) bf16 (scale folded in), (1, H*E) f32
    wk_ref, bk_ref,                 # (d_model, H*E) bf16, (1, H*E) f32
    wv_ref, bv_ref,                 # (d_model, H*D) bf16, (1, H*D) f32
    wo_ref, bo_ref,                 # (H*D, d_model) bf16, (1, d_model) f32
    o_ref,                          # (tL, d_model) f32
    q_hd_ref,                       # VMEM (H, tL, E) bf16 : head-major scaled Q (per (b, qi))
    m_ref, l_ref,                   # VMEM (H, tL, 1) f32  : running max / denom
    acc_ref,                        # VMEM (H, tL, D) f32  : context accumulator
    *, n_heads, d_keys, d_values):
    H, E, D = n_heads, d_keys, d_values
    si = pl.program_id(2)

    @pl.when(si == 0)
    def _init():
        # Project this L-tile's queries once per (b, qi). Softmax scale is
        # already folded into wq/bq, so no in-kernel scale multiply.
        x_q = q_ref[...].astype(jnp.bfloat16)
        qp = jnp.dot(x_q, wq_ref[...], preferred_element_type=jnp.float32) + bq_ref[...]
        tl = qp.shape[0]
        q_hd_ref[...] = pltpu.einshape("lhe->hle",
                                       qp.reshape(tl, H, E)).astype(jnp.bfloat16)
        m_ref[...] = jnp.full_like(m_ref, -jnp.inf)
        l_ref[...] = jnp.zeros_like(l_ref)
        acc_ref[...] = jnp.zeros_like(acc_ref)

    # K / V projections for this S-tile: lane-dense (tS, H*E)/(tS, H*D) MXU
    # matmuls with full K = d_model contraction depth, then ONE head-major
    # relayout each (no per-head lane slicing).
    x_k = k_ref[...].astype(jnp.bfloat16)
    x_v = v_ref[...].astype(jnp.bfloat16)
    kp = jnp.dot(x_k, wk_ref[...], preferred_element_type=jnp.float32) + bk_ref[...]
    vp = jnp.dot(x_v, wv_ref[...], preferred_element_type=jnp.float32) + bv_ref[...]
    ts = kp.shape[0]
    k_hd = pltpu.einshape("she->hse", kp.reshape(ts, H, E)).astype(jnp.bfloat16)
    v_hd = pltpu.einshape("shd->hsd", vp.reshape(ts, H, D)).astype(jnp.bfloat16)

    # Head-batched scores + online softmax. Elementwise math stays f32 (v5e
    # has no bf16 VPU/EUP path); MXU operands are bf16 with f32 accumulation.
    s = jnp.einsum("hle,hse->hls", q_hd_ref[...], k_hd,
                   preferred_element_type=jnp.float32)              # (H, tL, tS)
    m_prev = m_ref[...]
    m_new = jnp.maximum(m_prev, jnp.max(s, axis=-1, keepdims=True))
    alpha = jnp.exp(m_prev - m_new)
    p = jnp.exp(s - m_new)
    l_ref[...] = alpha * l_ref[...] + jnp.sum(p, axis=-1, keepdims=True)
    acc_ref[...] = alpha * acc_ref[...] + jnp.einsum(
        "hls,hsd->hld", p.astype(jnp.bfloat16), v_hd,
        preferred_element_type=jnp.float32)
    m_ref[...] = m_new

    @pl.when(si == pl.num_programs(2) - 1)
    def _finalize():
        # Normalize, fold heads into a lane-dense (tL, H*D) context, and apply
        # the output projection (K = H*D = d_model contraction depth).
        ctx = acc_ref[...] * pl.reciprocal(l_ref[...], approx=True)  # (H, tL, D)
        tl = ctx.shape[1]
        ctx = pltpu.einshape("hld->lhd", ctx).reshape(tl, H * D)
        out = jnp.dot(ctx.astype(jnp.bfloat16), wo_ref[...],
                      preferred_element_type=jnp.float32) + bo_ref[...]
        o_ref[...] = out.astype(o_ref.dtype)


# ---------------------------------------------------------------------------
# Wrapper
# ---------------------------------------------------------------------------
def _pick_tile(n, target):
    """Largest multiple-of-8 divisor of n that is <= target (or n itself)."""
    if n <= target:
        return n
    t = (target // 8) * 8
    while t >= 8:
        if n % t == 0:
            return t
        t -= 8
    return n


def _vmem_and_tile_targets():
    """Per-generation VMEM limit and L/S tile targets."""
    try:
        cap = getattr(pltpu.get_tpu_info(), "vmem_capacity_bytes", 64 * 1024 * 1024)
    except Exception:
        cap = 64 * 1024 * 1024
    if cap >= 100 * 1024 * 1024:                 # v5e / v6e: 128 MiB physical VMEM
        return 96 * 1024 * 1024, 512, 1024
    return 40 * 1024 * 1024, 256, 512            # v7x (64 MiB) / conservative default


def prepare_attention_params(params):
    """One-time weight preparation, hoisted out of the per-call hot path:
    transpose torch-layout (d_out, d_in) weights to (d_in, d_out), cast to
    bf16, and fold the softmax scale (1/sqrt(E)) into wq / bq."""
    H, E, D = params["n_heads"], params["d_keys"], params["d_values"]
    scale = 1.0 / math.sqrt(E)
    cdt = jnp.bfloat16
    return dict(
        wq=(params["wq"].T * scale).astype(cdt),
        bq=(params["bq"] * scale).reshape(1, -1).astype(jnp.float32),
        wk=params["wk"].T.astype(cdt),
        bk=params["bk"].reshape(1, -1).astype(jnp.float32),
        wv=params["wv"].T.astype(cdt),
        bv=params["bv"].reshape(1, -1).astype(jnp.float32),
        wo=params["wo"].T.astype(cdt),
        bo=params["bo"].reshape(1, -1).astype(jnp.float32),
        n_heads=H, d_keys=E, d_values=D,
    )


def attention_layer_forward(kparams, queries, keys, values,
                            tile_l=None, tile_s=None):
    """Pallas forward of the fused AttentionLayer. f32 in / f32 out."""
    B, L, d_model = queries.shape
    S = keys.shape[1]
    H, E, D = kparams["n_heads"], kparams["d_keys"], kparams["d_values"]

    vmem_limit, l_target, s_target = _vmem_and_tile_targets()
    tL = tile_l or _pick_tile(L, l_target)
    tS = tile_s or _pick_tile(S, s_target)
    assert L % tL == 0 and S % tS == 0
    grid = (B, L // tL, S // tS)

    kern = functools.partial(_flash_attention_layer_kernel,
                             n_heads=H, d_keys=E, d_values=D)

    def w_spec(shape):
        # Constant index map -> block stays resident in VMEM across the whole
        # grid; single-buffer it (no point double-buffering a never-refetched
        # block; saves VMEM, matters most on v7x's 64 MiB).
        return pl.BlockSpec(shape, lambda b, qi, si: (0, 0),
                            pipeline_mode=pl.Buffered(1))

    q_spec = pl.BlockSpec((pl.Squeezed(), tL, d_model), lambda b, qi, si: (b, qi, 0))
    kv_spec = pl.BlockSpec((pl.Squeezed(), tS, d_model), lambda b, qi, si: (b, si, 0))
    o_spec = pl.BlockSpec((pl.Squeezed(), tL, d_model), lambda b, qi, si: (b, qi, 0))

    return pl.pallas_call(
        kern,
        out_shape=jax.ShapeDtypeStruct((B, L, d_model), jnp.float32),
        grid=grid,
        in_specs=[
            q_spec, kv_spec, kv_spec,
            w_spec((d_model, H * E)), w_spec((1, H * E)),
            w_spec((d_model, H * E)), w_spec((1, H * E)),
            w_spec((d_model, H * D)), w_spec((1, H * D)),
            w_spec((H * D, d_model)), w_spec((1, d_model)),
        ],
        out_specs=o_spec,
        scratch_shapes=[
            pltpu.VMEM((H, tL, E), jnp.bfloat16),   # head-major Q (per (b, qi))
            pltpu.VMEM((H, tL, 1), jnp.float32),    # running max
            pltpu.VMEM((H, tL, 1), jnp.float32),    # running denom
            pltpu.VMEM((H, tL, D), jnp.float32),    # context accumulator
        ],
        compiler_params=pltpu.CompilerParams(
            dimension_semantics=("parallel", "parallel", "arbitrary"),
            vmem_limit_bytes=vmem_limit),
    )(queries, keys, values,
      kparams["wq"], kparams["bq"], kparams["wk"], kparams["bk"],
      kparams["wv"], kparams["bv"], kparams["wo"], kparams["bo"])


# ---------------------------------------------------------------------------
# Parameter init (torch nn.Linear-style)
# ---------------------------------------------------------------------------
def _init_linear(key, d_in, d_out):
    kw, kb = jax.random.split(key)
    bound = 1.0 / math.sqrt(d_in)
    w = jax.random.uniform(kw, (d_out, d_in), jnp.float32, -bound, bound)
    b = jax.random.uniform(kb, (d_out,), jnp.float32, -bound, bound)
    return w, b


def init_attention_layer(key, d_model, n_heads, d_keys=None, d_values=None):
    d_keys = d_keys or d_model // n_heads
    d_values = d_values or d_model // n_heads
    kq, kk, kv, ko = jax.random.split(key, 4)
    wq, bq = _init_linear(kq, d_model, d_keys * n_heads)
    wk, bk = _init_linear(kk, d_model, d_keys * n_heads)
    wv, bv = _init_linear(kv, d_model, d_values * n_heads)
    wo, bo = _init_linear(ko, d_values * n_heads, d_model)
    return dict(wq=wq, bq=bq, wk=wk, bk=bk, wv=wv, bv=bv, wo=wo, bo=bo,
                n_heads=n_heads, d_keys=d_keys, d_values=d_values)


# ---------------------------------------------------------------------------
# Pure-JAX references (f32 exact, and bf16-emulated to match kernel precision)
# ---------------------------------------------------------------------------
def reference_forward(params, queries, keys, values, compute_dtype=jnp.float32):
    B, L, d_model = queries.shape
    S = keys.shape[1]
    H, E, D = params["n_heads"], params["d_keys"], params["d_values"]
    cdt = compute_dtype

    def lin(x, w, b):
        return jnp.dot(x.astype(cdt), w.T.astype(cdt),
                       preferred_element_type=jnp.float32) + b

    q = lin(queries, params["wq"], params["bq"]).reshape(B, L, H, E)
    k = lin(keys, params["wk"], params["bk"]).reshape(B, S, H, E)
    v = lin(values, params["wv"], params["bv"]).reshape(B, S, H, D)
    scale = 1.0 / math.sqrt(E)
    scores = jnp.einsum("blhe,bshe->bhls",
                        (q * scale).astype(cdt), k.astype(cdt),
                        preferred_element_type=jnp.float32)
    A = jax.nn.softmax(scores, axis=-1)
    out = jnp.einsum("bhls,bshd->blhd", A.astype(cdt), v.astype(cdt),
                     preferred_element_type=jnp.float32).reshape(B, L, H * D)
    return lin(out, params["wo"], params["bo"])


# ---------------------------------------------------------------------------
if __name__ == "__main__":
    key = jax.random.PRNGKey(0)
    k_param, k_q, k_k, k_v = jax.random.split(key, 4)

    # --- test 1: single-tile path (grid = (B, 1, 1)) -----------------------
    B, L, S, d_model, n_heads = 2, 8, 8, 32, 4
    params = init_attention_layer(k_param, d_model, n_heads)
    kparams = prepare_attention_params(params)

    queries = jax.random.normal(k_q, (B, L, d_model), jnp.float32)
    keys = jax.random.normal(k_k, (B, S, d_model), jnp.float32)
    values = jax.random.normal(k_v, (B, S, d_model), jnp.float32)

    out = attention_layer_forward(kparams, queries, keys, values)
    out = jax.block_until_ready(out)
    assert out.shape == (B, L, d_model)

    ref_bf16 = reference_forward(params, queries, keys, values, jnp.bfloat16)
    assert jnp.allclose(out, ref_bf16, atol=2e-2, rtol=2e-2), \
        "mismatch vs bf16-precision reference (single tile)"
    ref_f32 = reference_forward(params, queries, keys, values, jnp.float32)
    assert jnp.allclose(out, ref_f32, atol=5e-2, rtol=5e-2), \
        "mismatch vs f32 reference (single tile)"

    # --- test 2: exercise the flash L/S tiling (grid = (B, 2, 3)) ----------
    L2, S2 = 16, 24
    q2 = jax.random.normal(jax.random.fold_in(k_q, 1), (B, L2, d_model), jnp.float32)
    k2 = jax.random.normal(jax.random.fold_in(k_k, 1), (B, S2, d_model), jnp.float32)
    v2 = jax.random.normal(jax.random.fold_in(k_v, 1), (B, S2, d_model), jnp.float32)

    out2 = attention_layer_forward(kparams, q2, k2, v2, tile_l=8, tile_s=8)
    out2 = jax.block_until_ready(out2)
    assert out2.shape == (B, L2, d_model)

    ref2_bf16 = reference_forward(params, q2, k2, v2, jnp.bfloat16)
    assert jnp.allclose(out2, ref2_bf16, atol=2e-2, rtol=2e-2), \
        "mismatch vs bf16-precision reference (tiled)"
    ref2_f32 = reference_forward(params, q2, k2, v2, jnp.float32)
    assert jnp.allclose(out2, ref2_f32, atol=5e-2, rtol=5e-2), \
        "mismatch vs f32 reference (tiled)"

    print("KERNEL_OK")
</pallas_src>

<mosaic_0001>
module attributes {stable_mosaic.version = 11 : i64} {
  func.func @_flash_attention_layer_kernel(%arg0: i32, %arg1: i32, %arg2: i32, %arg3: memref<1x8x32xf32, #tpu.memory_space<vmem>>, %arg4: memref<1x8x32xf32, #tpu.memory_space<vmem>>, %arg5: memref<1x8x32xf32, #tpu.memory_space<vmem>>, %arg6: memref<32x32xbf16, #tpu.memory_space<vmem>>, %arg7: memref<1x32xf32, #tpu.memory_space<vmem>>, %arg8: memref<32x32xbf16, #tpu.memory_space<vmem>>, %arg9: memref<1x32xf32, #tpu.memory_space<vmem>>, %arg10: memref<32x32xbf16, #tpu.memory_space<vmem>>, %arg11: memref<1x32xf32, #tpu.memory_space<vmem>>, %arg12: memref<32x32xbf16, #tpu.memory_space<vmem>>, %arg13: memref<1x32xf32, #tpu.memory_space<vmem>>, %arg14: memref<1x8x32xf32, #tpu.memory_space<vmem>>, %arg15: memref<4x8x8xbf16, #tpu.memory_space<vmem>>, %arg16: memref<4x8x1xf32, #tpu.memory_space<vmem>>, %arg17: memref<4x8x1xf32, #tpu.memory_space<vmem>>, %arg18: memref<4x8x8xf32, #tpu.memory_space<vmem>>) attributes {dimension_semantics = [#tpu.dimension_semantics<parallel>, #tpu.dimension_semantics<parallel>, #tpu.dimension_semantics<arbitrary>], iteration_bounds = array<i64: 2, 1, 1>, scalar_prefetch = 0 : i64, scratch_operands = 4 : i64, tpu.core_type = #tpu.core_type<tc>, window_params = [{transform_indices = @transform_0, window_bounds = array<i64: 1, 8, 32>}, {transform_indices = @transform_1, window_bounds = array<i64: 1, 8, 32>}, {transform_indices = @transform_2, window_bounds = array<i64: 1, 8, 32>}, {pipeline_mode = #tpu.pipeline_mode<synchronous>, transform_indices = @transform_3, window_bounds = array<i64: 32, 32>}, {pipeline_mode = #tpu.pipeline_mode<synchronous>, transform_indices = @transform_4, window_bounds = array<i64: 1, 32>}, {pipeline_mode = #tpu.pipeline_mode<synchronous>, transform_indices = @transform_5, window_bounds = array<i64: 32, 32>}, {pipeline_mode = #tpu.pipeline_mode<synchronous>, transform_indices = @transform_6, window_bounds = array<i64: 1, 32>}, {pipeline_mode = #tpu.pipeline_mode<synchronous>, transform_indices = @transform_7, window_bounds = array<i64: 32, 32>}, {pipeline_mode = #tpu.pipeline_mode<synchronous>, transform_indices = @transform_8, window_bounds = array<i64: 1, 32>}, {pipeline_mode = #tpu.pipeline_mode<synchronous>, transform_indices = @transform_9, window_bounds = array<i64: 32, 32>}, {pipeline_mode = #tpu.pipeline_mode<synchronous>, transform_indices = @transform_10, window_bounds = array<i64: 1, 32>}, {transform_indices = @transform_11, window_bounds = array<i64: 1, 8, 32>}]} {
    %c0_i32 = arith.constant 0 : i32
    %0 = arith.cmpi eq, %arg2, %c0_i32 : i32
    %1 = arith.extui %0 : i1 to i32
    %c0_i32_0 = arith.constant 0 : i32
    %2 = arith.cmpi ne, %1, %c0_i32_0 : i32
    scf.if %2 {
      %c0_42 = arith.constant 0 : index
      %c0_43 = arith.constant 0 : index
      %c0_44 = arith.constant 0 : index
      %53 = vector.load %arg3[%c0_42, %c0_43, %c0_44] : memref<1x8x32xf32, #tpu.memory_space<vmem>>, vector<1x8x32xf32>
      %54 = vector.shape_cast %53 : vector<1x8x32xf32> to vector<8x32xf32>
      %55 = arith.truncf %54 : vector<8x32xf32> to vector<8x32xbf16>
      %c0_45 = arith.constant 0 : index
      %c0_46 = arith.constant 0 : index
      %56 = vector.load %arg6[%c0_45, %c0_46] : memref<32x32xbf16, #tpu.memory_space<vmem>>, vector<32x32xbf16>
      %cst_47 = arith.constant dense<0.000000e+00> : vector<8x32xf32>
      %57 = tpu.matmul %55, %56, %cst_47 {dimension_numbers = #tpu.dot_dimension_numbers<[1], [0], [0], [1], [0, 0, 1, 1], [], []>} : vector<8x32xbf16>, vector<32x32xbf16>, vector<8x32xf32> -> vector<8x32xf32>
      %c0_48 = arith.constant 0 : index
      %c0_49 = arith.constant 0 : index
      %58 = vector.load %arg7[%c0_48, %c0_49] : memref<1x32xf32, #tpu.memory_space<vmem>>, vector<1x32xf32>
      %59 = vector.broadcast %58 : vector<1x32xf32> to vector<8x32xf32>
      %60 = arith.addf %57, %59 : vector<8x32xf32>
      %61 = vector.shape_cast %60 : vector<8x32xf32> to vector<8x4x8xf32>
      %62 = tpu.transpose %61, [1, 0, 2] : vector<8x4x8xf32> -> vector<4x8x8xf32>
      %63 = arith.truncf %62 : vector<4x8x8xf32> to vector<4x8x8xbf16>
      %c0_50 = arith.constant 0 : index
      %c0_51 = arith.constant 0 : index
      %c0_52 = arith.constant 0 : index
      %64 = vector.load %arg15[%c0_50, %c0_51, %c0_52] : memref<4x8x8xbf16, #tpu.memory_space<vmem>>, vector<4x8x8xbf16>
      tpu.vector_store %arg15[%c0_50, %c0_51, %c0_52], %63 {strides = array<i32>} : memref<4x8x8xbf16, #tpu.memory_space<vmem>>, vector<4x8x8xbf16>,
      %cst_53 = arith.constant 0xFF800000 : f32
      %65 = vector.broadcast %cst_53 : f32 to vector<4x8x1xf32>
      %c0_54 = arith.constant 0 : index
      %c0_55 = arith.constant 0 : index
      %c0_56 = arith.constant 0 : index
      %66 = vector.load %arg16[%c0_54, %c0_55, %c0_56] : memref<4x8x1xf32, #tpu.memory_space<vmem>>, vector<4x8x1xf32>
      tpu.vector_store %arg16[%c0_54, %c0_55, %c0_56], %65 {strides = array<i32>} : memref<4x8x1xf32, #tpu.memory_space<vmem>>, vector<4x8x1xf32>,
      %cst_57 = arith.constant 0.000000e+00 : f32
      %67 = vector.broadcast %cst_57 : f32 to vector<4x8x1xf32>
      %c0_58 = arith.constant 0 : index
      %c0_59 = arith.constant 0 : index
      %c0_60 = arith.constant 0 : index
      %68 = vector.load %arg17[%c0_58, %c0_59, %c0_60] : memref<4x8x1xf32, #tpu.memory_space<vmem>>, vector<4x8x1xf32>
      tpu.vector_store %arg17[%c0_58, %c0_59, %c0_60], %67 {strides = array<i32>} : memref<4x8x1xf32, #tpu.memory_space<vmem>>, vector<4x8x1xf32>,
      %cst_61 = arith.constant 0.000000e+00 : f32
      %69 = vector.broadcast %cst_61 : f32 to vector<4x8x8xf32>
      %c0_62 = arith.constant 0 : index
      %c0_63 = arith.constant 0 : index
      %c0_64 = arith.constant 0 : index
      %70 = vector.load %arg18[%c0_62, %c0_63, %c0_64] : memref<4x8x8xf32, #tpu.memory_space<vmem>>, vector<4x8x8xf32>
      tpu.vector_store %arg18[%c0_62, %c0_63, %c0_64], %69 {strides = array<i32>} : memref<4x8x8xf32, #tpu.memory_space<vmem>>, vector<4x8x8xf32>,
    } else {
    }
    %c0 = arith.constant 0 : index
    %c0_1 = arith.constant 0 : index
    %c0_2 = arith.constant 0 : index
    %3 = vector.load %arg4[%c0, %c0_1, %c0_2] : memref<1x8x32xf32, #tpu.memory_space<vmem>>, vector<1x8x32xf32>
    %4 = vector.shape_cast %3 : vector<1x8x32xf32> to vector<8x32xf32>
    %5 = arith.truncf %4 : vector<8x32xf32> to vector<8x32xbf16>
    %c0_3 = arith.constant 0 : index
    %c0_4 = arith.constant 0 : index
    %c0_5 = arith.constant 0 : index
    %6 = vector.load %arg5[%c0_3, %c0_4, %c0_5] : memref<1x8x32xf32, #tpu.memory_space<vmem>>, vector<1x8x32xf32>
    %7 = vector.shape_cast %6 : vector<1x8x32xf32> to vector<8x32xf32>
    %8 = arith.truncf %7 : vector<8x32xf32> to vector<8x32xbf16>
    %c0_6 = arith.constant 0 : index
    %c0_7 = arith.constant 0 : index
    %9 = vector.load %arg8[%c0_6, %c0_7] : memref<32x32xbf16, #tpu.memory_space<vmem>>, vector<32x32xbf16>
    %cst = arith.constant dense<0.000000e+00> : vector<8x32xf32>
    %10 = tpu.matmul %5, %9, %cst {dimension_numbers = #tpu.dot_dimension_numbers<[1], [0], [0], [1], [0, 0, 1, 1], [], []>} : vector<8x32xbf16>, vector<32x32xbf16>, vector<8x32xf32> -> vector<8x32xf32>
    %c0_8 = arith.constant 0 : index
    %c0_9 = arith.constant 0 : index
    %11 = vector.load %arg9[%c0_8, %c0_9] : memref<1x32xf32, #tpu.memory_space<vmem>>, vector<1x32xf32>
    %12 = vector.broadcast %11 : vector<1x32xf32> to vector<8x32xf32>
    %13 = arith.addf %10, %12 : vector<8x32xf32>
    %c0_10 = arith.constant 0 : index
    %c0_11 = arith.constant 0 : index
    %14 = vector.load %arg10[%c0_10, %c0_11] : memref<32x32xbf16, #tpu.memory_space<vmem>>, vector<32x32xbf16>
    %cst_12 = arith.constant dense<0.000000e+00> : vector<8x32xf32>
    %15 = tpu.matmul %8, %14, %cst_12 {dimension_numbers = #tpu.dot_dimension_numbers<[1], [0], [0], [1], [0, 0, 1, 1], [], []>} : vector<8x32xbf16>, vector<32x32xbf16>, vector<8x32xf32> -> vector<8x32xf32>
    %c0_13 = arith.constant 0 : index
    %c0_14 = arith.constant 0 : index
    %16 = vector.load %arg11[%c0_13, %c0_14] : memref<1x32xf32, #tpu.memory_space<vmem>>, vector<1x32xf32>
    %17 = vector.broadcast %16 : vector<1x32xf32> to vector<8x32xf32>
    %18 = arith.addf %15, %17 : vector<8x32xf32>
    %19 = vector.shape_cast %13 : vector<8x32xf32> to vector<8x4x8xf32>
    %20 = tpu.transpose %19, [1, 0, 2] : vector<8x4x8xf32> -> vector<4x8x8xf32>
    %21 = arith.truncf %20 : vector<4x8x8xf32> to vector<4x8x8xbf16>
    %22 = vector.shape_cast %18 : vector<8x32xf32> to vector<8x4x8xf32>
    %23 = tpu.transpose %22, [1, 0, 2] : vector<8x4x8xf32> -> vector<4x8x8xf32>
    %24 = arith.truncf %23 : vector<4x8x8xf32> to vector<4x8x8xbf16>
    %c0_15 = arith.constant 0 : index
    %c0_16 = arith.constant 0 : index
    %c0_17 = arith.constant 0 : index
    %25 = vector.load %arg15[%c0_15, %c0_16, %c0_17] : memref<4x8x8xbf16, #tpu.memory_space<vmem>>, vector<4x8x8xbf16>
    "tpu.trace_start"() <{level = 10 : i32, message = "hle,hse->hls"}> : () -> ()
    %cst_18 = arith.constant dense<0.000000e+00> : vector<4x8x8xf32>
    %26 = tpu.matmul %25, %21, %cst_18 {dimension_numbers = #tpu.dot_dimension_numbers<[2], [2], [1], [1], [0, 0, 0, 1, 1, 1], [0], [0]>} : vector<4x8x8xbf16>, vector<4x8x8xbf16>, vector<4x8x8xf32> -> vector<4x8x8xf32>
    "tpu.trace_stop"() : () -> ()
    %c0_19 = arith.constant 0 : index
    %c0_20 = arith.constant 0 : index
    %c0_21 = arith.constant 0 : index
    %27 = vector.load %arg16[%c0_19, %c0_20, %c0_21] : memref<4x8x1xf32, #tpu.memory_space<vmem>>, vector<4x8x1xf32>
    %cst_22 = arith.constant dense<0xFF800000> : vector<4x8xf32>
    %28 = vector.multi_reduction <maximumf>, %26, %cst_22 [2] : vector<4x8x8xf32> to vector<4x8xf32>
    %29 = vector.shape_cast %28 : vector<4x8xf32> to vector<4x8x1xf32>
    %30 = arith.maximumf %27, %29 : vector<4x8x1xf32>
    %31 = arith.subf %27, %30 : vector<4x8x1xf32>
    %32 = math.exp %31 : vector<4x8x1xf32>
    %33 = vector.broadcast %30 : vector<4x8x1xf32> to vector<4x8x8xf32>
    %34 = arith.subf %26, %33 : vector<4x8x8xf32>
    %35 = math.exp %34 : vector<4x8x8xf32>
    %c0_23 = arith.constant 0 : index
    %c0_24 = arith.constant 0 : index
    %c0_25 = arith.constant 0 : index
    %36 = vector.load %arg17[%c0_23, %c0_24, %c0_25] : memref<4x8x1xf32, #tpu.memory_space<vmem>>, vector<4x8x1xf32>
    %37 = arith.mulf %32, %36 : vector<4x8x1xf32>
    %cst_26 = arith.constant dense<0.000000e+00> : vector<4x8xf32>
    %38 = vector.multi_reduction <add>, %35, %cst_26 [2] : vector<4x8x8xf32> to vector<4x8xf32>
    %39 = vector.shape_cast %38 : vector<4x8xf32> to vector<4x8x1xf32>
    %40 = arith.addf %37, %39 : vector<4x8x1xf32>
    %c0_27 = arith.constant 0 : index
    %c0_28 = arith.constant 0 : index
    %c0_29 = arith.constant 0 : index
    %41 = vector.load %arg17[%c0_27, %c0_28, %c0_29] : memref<4x8x1xf32, #tpu.memory_space<vmem>>, vector<4x8x1xf32>
    tpu.vector_store %arg17[%c0_27, %c0_28, %c0_29], %40 {strides = array<i32>} : memref<4x8x1xf32, #tpu.memory_space<vmem>>, vector<4x8x1xf32>,
    %c0_30 = arith.constant 0 : index
    %c0_31 = arith.constant 0 : index
    %c0_32 = arith.constant 0 : index
    %42 = vector.load %arg18[%c0_30, %c0_31, %c0_32] : memref<4x8x8xf32, #tpu.memory_space<vmem>>, vector<4x8x8xf32>
    %43 = vector.broadcast %32 : vector<4x8x1xf32> to vector<4x8x8xf32>
    %44 = arith.mulf %43, %42 : vector<4x8x8xf32>
    %45 = arith.truncf %35 : vector<4x8x8xf32> to vector<4x8x8xbf16>
    "tpu.trace_start"() <{level = 10 : i32, message = "hls,hsd->hld"}> : () -> ()
    %cst_33 = arith.constant dense<0.000000e+00> : vector<4x8x8xf32>
    %46 = tpu.matmul %45, %24, %cst_33 {dimension_numbers = #tpu.dot_dimension_numbers<[2], [1], [1], [2], [0, 0, 0, 1, 1, 2], [0], [0]>} : vector<4x8x8xbf16>, vector<4x8x8xbf16>, vector<4x8x8xf32> -> vector<4x8x8xf32>
    "tpu.trace_stop"() : () -> ()
    %47 = arith.addf %44, %46 : vector<4x8x8xf32>
    %c0_34 = arith.constant 0 : index
    %c0_35 = arith.constant 0 : index
    %c0_36 = arith.constant 0 : index
    %48 = vector.load %arg18[%c0_34, %c0_35, %c0_36] : memref<4x8x8xf32, #tpu.memory_space<vmem>>, vector<4x8x8xf32>
    tpu.vector_store %arg18[%c0_34, %c0_35, %c0_36], %47 {strides = array<i32>} : memref<4x8x8xf32, #tpu.memory_space<vmem>>, vector<4x8x8xf32>,
    %c0_37 = arith.constant 0 : index
    %c0_38 = arith.constant 0 : index
    %c0_39 = arith.constant 0 : index
    %49 = vector.load %arg16[%c0_37, %c0_38, %c0_39] : memref<4x8x1xf32, #tpu.memory_space<vmem>>, vector<4x8x1xf32>
    tpu.vector_store %arg16[%c0_37, %c0_38, %c0_39], %30 {strides = array<i32>} : memref<4x8x1xf32, #tpu.memory_space<vmem>>, vector<4x8x1xf32>,
    %c0_i32_40 = arith.constant 0 : i32
    %50 = arith.cmpi eq, %arg2, %c0_i32_40 : i32
    %51 = arith.extui %50 : i1 to i32
    %c0_i32_41 = arith.constant 0 : i32
    %52 = arith.cmpi ne, %51, %c0_i32_41 : i32
    scf.if %52 {
      %c0_42 = arith.constant 0 : index
      %c0_43 = arith.constant 0 : index
      %c0_44 = arith.constant 0 : index
      %53 = vector.load %arg18[%c0_42, %c0_43, %c0_44] : memref<4x8x8xf32, #tpu.memory_space<vmem>>, vector<4x8x8xf32>
      %c0_45 = arith.constant 0 : index
      %c0_46 = arith.constant 0 : index
      %c0_47 = arith.constant 0 : index
      %54 = vector.load %arg17[%c0_45, %c0_46, %c0_47] : memref<4x8x1xf32, #tpu.memory_space<vmem>>, vector<4x8x1xf32>
      %55 = tpu.reciprocal %54 {approx = true} : vector<4x8x1xf32> -> vector<4x8x1xf32>
      %56 = vector.broadcast %55 : vector<4x8x1xf32> to vector<4x8x8xf32>
      %57 = arith.mulf %53, %56 : vector<4x8x8xf32>
      %58 = tpu.transpose %57, [1, 0, 2] : vector<4x8x8xf32> -> vector<8x4x8xf32>
      %59 = vector.shape_cast %58 : vector<8x4x8xf32> to vector<8x32xf32>
      %60 = arith.truncf %59 : vector<8x32xf32> to vector<8x32xbf16>
      %c0_48 = arith.constant 0 : index
      %c0_49 = arith.constant 0 : index
      %61 = vector.load %arg12[%c0_48, %c0_49] : memref<32x32xbf16, #tpu.memory_space<vmem>>, vector<32x32xbf16>
      %cst_50 = arith.constant dense<0.000000e+00> : vector<8x32xf32>
      %62 = tpu.matmul %60, %61, %cst_50 {dimension_numbers = #tpu.dot_dimension_numbers<[1], [0], [0], [1], [0, 0, 1, 1], [], []>} : vector<8x32xbf16>, vector<32x32xbf16>, vector<8x32xf32> -> vector<8x32xf32>
      %c0_51 = arith.constant 0 : index
      %c0_52 = arith.constant 0 : index
      %63 = vector.load %arg13[%c0_51, %c0_52] : memref<1x32xf32, #tpu.memory_space<vmem>>, vector<1x32xf32>
      %64 = vector.broadcast %63 : vector<1x32xf32> to vector<8x32xf32>
      %65 = arith.addf %62, %64 : vector<8x32xf32>
      %c0_53 = arith.constant 0 : index
      %c0_54 = arith.constant 0 : index
      %c0_55 = arith.constant 0 : index
      %66 = vector.load %arg14[%c0_53, %c0_54, %c0_55] : memref<1x8x32xf32, #tpu.memory_space<vmem>>, vector<1x8x32xf32>
      %67 = vector.shape_cast %66 : vector<1x8x32xf32> to vector<8x32xf32>
      %68 = vector.shape_cast %65 : vector<8x32xf32> to vector<1x8x32xf32>
      tpu.vector_store %arg14[%c0_53, %c0_54, %c0_55], %68 {strides = array<i32>} : memref<1x8x32xf32, #tpu.memory_space<vmem>>, vector<1x8x32xf32>,
    } else {
    }
    return
  }
  func.func @transform_0(%arg0: i32, %arg1: i32, %arg2: i32) -> (i32, i32, i32) {
    %c0_i32 = arith.constant 0 : i32
    %c0_i32_0 = arith.constant 0 : i32
    return %arg0, %arg1, %c0_i32 : i32, i32, i32
  }
  func.func @transform_1(%arg0: i32, %arg1: i32, %arg2: i32) -> (i32, i32, i32) {
    %c0_i32 = arith.constant 0 : i32
    %c0_i32_0 = arith.constant 0 : i32
    return %arg0, %arg2, %c0_i32 : i32, i32, i32
  }
  func.func @transform_2(%arg0: i32, %arg1: i32, %arg2: i32) -> (i32, i32, i32) {
    %c0_i32 = arith.constant 0 : i32
    %c0_i32_0 = arith.constant 0 : i32
    return %arg0, %arg2, %c0_i32 : i32, i32, i32
  }
  func.func @transform_3(%arg0: i32, %arg1: i32, %arg2: i32) -> (i32, i32) {
    %c0_i32 = arith.constant 0 : i32
    %c0_i32_0 = arith.constant 0 : i32
    %c0_i32_1 = arith.constant 0 : i32
    return %c0_i32, %c0_i32_0 : i32, i32
  }
  func.func @transform_4(%arg0: i32, %arg1: i32, %arg2: i32) -> (i32, i32) {
    %c0_i32 = arith.constant 0 : i32
    %c0_i32_0 = arith.constant 0 : i32
    %c0_i32_1 = arith.constant 0 : i32
    return %c0_i32, %c0_i32_0 : i32, i32
  }
  func.func @transform_5(%arg0: i32, %arg1: i32, %arg2: i32) -> (i32, i32) {
    %c0_i32 = arith.constant 0 : i32
    %c0_i32_0 = arith.constant 0 : i32
    %c0_i32_1 = arith.constant 0 : i32
    return %c0_i32, %c0_i32_0 : i32, i32
  }
  func.func @transform_6(%arg0: i32, %arg1: i32, %arg2: i32) -> (i32, i32) {
    %c0_i32 = arith.constant 0 : i32
    %c0_i32_0 = arith.constant 0 : i32
    %c0_i32_1 = arith.constant 0 : i32
    return %c0_i32, %c0_i32_0 : i32, i32
  }
  func.func @transform_7(%arg0: i32, %arg1: i32, %arg2: i32) -> (i32, i32) {
    %c0_i32 = arith.constant 0 : i32
    %c0_i32_0 = arith.constant 0 : i32
    %c0_i32_1 = arith.constant 0 : i32
    return %c0_i32, %c0_i32_0 : i32, i32
  }
  func.func @transform_8(%arg0: i32, %arg1: i32, %arg2: i32) -> (i32, i32) {
    %c0_i32 = arith.constant 0 : i32
    %c0_i32_0 = arith.constant 0 : i32
    %c0_i32_1 = arith.constant 0 : i32
    return %c0_i32, %c0_i32_0 : i32, i32
  }
  func.func @transform_9(%arg0: i32, %arg1: i32, %arg2: i32) -> (i32, i32) {
    %c0_i32 = arith.constant 0 : i32
    %c0_i32_0 = arith.constant 0 : i32
    %c0_i32_1 = arith.constant 0 : i32
    return %c0_i32, %c0_i32_0 : i32, i32
  }
  func.func @transform_10(%arg0: i32, %arg1: i32, %arg2: i32) -> (i32, i32) {
    %c0_i32 = arith.constant 0 : i32
    %c0_i32_0 = arith.constant 0 : i32
    %c0_i32_1 = arith.constant 0 : i32
    return %c0_i32, %c0_i32_0 : i32, i32
  }
  func.func @transform_11(%arg0: i32, %arg1: i32, %arg2: i32) -> (i32, i32, i32) {
    %c0_i32 = arith.constant 0 : i32
    %c0_i32_0 = arith.constant 0 : i32
    return %arg0, %arg1, %c0_i32 : i32, i32, i32
  }
}

</mosaic_0001>

<bundles_post_ra>
// kernel: tpu_custom_call.1
= control target key start
LH: loop header
LB: loop body
LE: loop exit
PB: predicated region body
PF: predicated region fallthrough
CT: control target
= control target key end

     0   :  { %s2932_s0 = inlined_call_operand.hbm [shape: f32[2,8,32], index: 0, kind: input, shape index: {}]   ;;  %s2933_s1 = inlined_call_operand.hbm [shape: f32[2,8,32], index: 1, kind: input, shape index: {}]   ;;  %s2934_s2 = inlined_call_operand.hbm [shape: f32[2,8,32], index: 2, kind: input, shape index: {}]   ;;  %s2935_s3 = inlined_call_operand.hbm [shape: bf16[32,32], index: 3, kind: input, shape index: {}]   ;;  %s2936_s4 = inlined_call_operand.vmem [shape: f32[1,32], index: 4, kind: input, shape index: {}]   ;;  %s2937_s5 = inlined_call_operand.hbm [shape: bf16[32,32], index: 5, kind: input, shape index: {}]   ;;  %s2938_s6 = inlined_call_operand.vmem [shape: f32[1,32], index: 6, kind: input, shape index: {}]   ;;  %s2939_s7 = inlined_call_operand.hbm [shape: bf16[32,32], index: 7, kind: input, shape index: {}]   ;;  %s2940_s8 = inlined_call_operand.vmem [shape: f32[1,32], index: 8, kind: input, shape index: {}]   ;;  %s2941_s9 = inlined_call_operand.hbm [shape: bf16[32,32], index: 9, kind: input, shape index: {}]   ;;  %s2942_s10 = inlined_call_operand.vmem [shape: f32[1,32], index: 10, kind: input, shape index: {}]   ;;  %s2943_s11 = inlined_call_operand.hbm [shape: f32[2,8,32], index: 11, kind: output, shape index: {}]  }
   0x1   :  { %2957 = sst [smem:[#allocation31_spill]] %s2932_s0 }
   0x2   :  { %2958 = sst [smem:[#allocation32_spill]] %s2933_s1 }
   0x3   :  { %2959 = sst [smem:[#allocation33_spill]] %s2935_s3 }
   0x4   :  { %2960 = sst [smem:[#allocation34_spill]] %s2937_s5 }
   0x5   :  { %2961 = sst [smem:[#allocation35_spill]] %s2939_s7 }
   0x6   :  { %2962 = sst [smem:[#allocation36_spill]] %s2941_s9 }
   0x7   :  { %2963 = sst [smem:[#allocation37_spill]] %s2942_s10 }
   0x8   :  { %16 = vsyncpa [#allocation7], 0 }
   0x9   :  { %18 = vsyncpa [#allocation7 + $0x1], 0 }
   0xa   :  { %19 = vsyncpa [#allocation10], 0 }
   0xb   :  { %21 = vsyncpa [#allocation10 + $0x1], 0 }
   0xc   :  { %22 = vsyncpa [#allocation13], 0 }
   0xd   :  { %23 = vsyncpa [#allocation16], 0 }
   0xe   :  { %24 = vsyncpa [#allocation8], 0 }
   0xf   :  { %26 = vsyncpa [#allocation8 + $0x1], 0  ;;  %s2405_s17 = smov 0   ;;  %s2407_s18 = smov 0  }
  0x10   :  { %s2409_s19 = smov 0   ;;  %s2411_s20 = smov 0  }
  0x11   :  { %s2413_s21 = smov 0   ;;  %s2415_s22 = smov 0  }
  0x12 LB: > { %2964 = sst [smem:[#allocation24_spill]] %s2306_s17  ;;  %s2436_s23 = sadd.s32 4294967295, %s2326_s22   ;;  %s2326_s22 = sphi %s2415_s22, %s32_s22   ;;  %s2322_s21 = sphi %s2413_s21, %s2998_s21   ;;  %s2318_s20 = sphi %s2411_s20, %s2993_s20   ;;  %s2314_s19 = sphi %s2409_s19, %s2997_s19   ;;  %s2310_s18 = sphi %s2407_s18, %s2996_s18   ;;  %s2306_s17 = sphi %s2405_s17, %s2995_s17  }
  0x13   : > { %2965 = sst [smem:[#allocation25_spill]] %s2322_s21  ;;  %p1773_p0 = scmp.ge.s32.totalorder %s2326_s22, 1 }
  0x14   : > { %2966 = sst [smem:[#allocation26_spill]] %s2326_s22  ;;  %p74_p1 = scmp.eq.s32.totalorder %s2436_s23, 0 }
  0x15   : > { %p336_p2 = scmp.lt.s32.totalorder %s2326_s22, 3  ;;  %s2967_s3 = sld [smem:[#allocation33_spill]] }
  0x16   : > { %s2328_s28 = smov [#allocation12]   ;;  %p1778_p6 = scmp.ge.s32.totalorder %s2326_s22, 2 }
  0x17   : > { %p2444_p3 = pnand %p1773_p0, %p336_p2  ;;  %s349_s29 = sshll.u32 %s2328_s28, 4  ;;  %s350_s29 = int_to_ptr.vmem [resolvable:$true] %s349_s29 }
  0x18   : > { %s2970_s7 = sld [smem:[#allocation35_spill]]  ;;  %s2944_s15 = smov 64  }
  0x19   : > { %p1874_p4 = pneg %p2444_p3  ;;  %s2946_s16 = smov 4  }
  0x1a   : > { %s2331_s24 = smov [#allocation15]   ;;  %s1772_s28 = sadd.s32 4294967294, %s2326_s22  }
  0x1b   : > { %s347_s26 = sshll.u32 %s2967_s3, 4  ;;  %p2452_p5 = pnand %p1874_p4, %p74_p1  ;;  %s348_s26 = int_to_ptr.hbm [resolvable:$true] %s347_s26 }
  0x1c   : > { %s383_s25 = sshll.u32 %s2331_s24, 4  ;;  %s51_s12 = sadd.s32 1, %s2322_s21  ;;  %s384_s25 = int_to_ptr.vmem [resolvable:$true] %s383_s25 }
  0x1d   : > { %1877 = dma.hbm_to_vmem [thread:$0]  (!%p2452_p5), %s348_s26, 256, %s350_s29, [#allocation13], %s2944_s15, %s2944_s15, %s2946_s16  }
  0x1e   : > { %s381_s14 = sshll.u32 %s2970_s7, 4  ;;  %p53_p7 = scmp.ge.s32.totalorder %s51_s12, 2  ;;  %s382_s14 = int_to_ptr.hbm [resolvable:$true] %s381_s14 }
  0x1f   : > { %1883 = dma.hbm_to_vmem [thread:$0]  (!%p2452_p5), %s382_s14, 256, %s384_s25, [#allocation16], %s2944_s15, %s2944_s15, %s2946_s16  }
  0x20   : > { %s60_s13 = sadd.s32 1, %s2314_s19  ;;  %p67_p8 = scmp.ne.s32.totalorder %s2314_s19, %s2310_s18 }
  0x21   : > { %p68_p9 = scmp.eq.s32.totalorder %s2326_s22, 0  ;;  %s3000_s12 = smov (%p53_p7, %s51_s12), 0 }
  0x22   : > { %2971 = sst [smem:[#allocation27_spill]] %s3000_s12  ;;  %p73_p11 = scmp.ne.s32.totalorder %s2310_s18, %s2306_s17 }
  0x23   : > { %p2478_p10 = por %p68_p9, %p67_p8  ;;  %s55_s29 = ssub.s32 %s2322_s21, %s3000_s12 }
  0x24   : > { %p323_p12 = scmp.eq.s32.totalorder %s2436_s23, 1  ;;  %p58_p13 = scmp.eq.s32.totalorder %s55_s29, 0 }
  0x25   : > { %p2489_p0 = por %p74_p1, %p73_p11  ;;  %p329_p4 = scmp.eq.s32.totalorder %s1772_s28, 1 }
  0x26   : > { %p2493_p2 = por %p323_p12, %p67_p8  ;;  %p1905_p9 = scmp.lt.s32.totalorder %s2326_s22, 2 }
  0x27   : > { %s2498_s25 = scalar_select %p58_p13, %s2314_s19, %s60_s13  }
  0x28   : > { %s2974_s24 = scalar_select %p2493_p2, 1, 0 }
  0x29   : > { %2976 = sst [smem:[#allocation29_spill]] %s2498_s25  ;;  %p2500_p7 = por %p329_p4, %p73_p11 }
  0x2a   : > { %2975 = sst [smem:[#allocation28_spill]] %s2974_s24  ;;  %s2952_s16 = sand.u32 1, %s2314_s19  }
  0x2b   : > { %s2977_s15 = scalar_select %p2500_p7, 1, 0 }
  0x2c   : > { %s2507_s3 = sshll.u32 %s2322_s21, 3  ;;  %s2511_s29 = sshll.u32 %s2952_s16, 3 }
  0x2d   : > { %2978 = sst [smem:[#allocation30_spill]] %s2977_s15  ;;  %p2515_p8 = pnand %p1905_p9, %p2478_p10 }
  0x2e   : > { %s437_s28 = sand.u32 1, %s2326_s22   ;;  %s2980_s1 = sld [smem:[#allocation32_spill]] }
  0x2f   : > { %s441_s15 = scalar_lea.vmem [#allocation9], %s2511_s29  ;;  %s2981_s5 = sld [smem:[#allocation34_spill]] }
  0x30   : > { %s450_s21 = sshll.u32 %s441_s15, 4  ;;  %s438_s24 = scalar_lea.sflag [#allocation10], %s437_s28  ;;  %s451_s21 = int_to_ptr.vmem [resolvable:$true] %s450_s21 }
  0x31   : > { %s2332_s22 = smov [#allocation14]   ;;  %s2982_s9 = sld [smem:[#allocation36_spill]] }
  0x32   : > { %s366_s12 = sshll.u32 %s2332_s22, 4  ;;  %s2984_s16 = smov 64   ;;  %s367_s12 = int_to_ptr.vmem [resolvable:$true] %s366_s12 }
  0x33   : > { %s2333_s28 = smov [#allocation17]   ;;  %s2985_s0 = sld [smem:[#allocation31_spill]] }
  0x34   : > { %s446_s25 = scalar_lea.hbm %s2980_s1, %s2507_s3  ;;  %s421_s13 = scalar_lea.vmem [#allocation6], %s2511_s29 }
  0x35   : > { %s448_s17 = sshll.u32 %s446_s25, 4  ;;  %s364_s10 = sshll.u32 %s2981_s5, 4  ;;  %s449_s17 = int_to_ptr.hbm [resolvable:$true] %s448_s17  ;;  %s365_s10 = int_to_ptr.hbm [resolvable:$true] %s364_s10 }
  0x36   : > { %1893 = dma.hbm_to_vmem [thread:$0]  (!%p2515_p8), %s449_s17, 128, %s451_s21, %s438_s24  }
  0x37   : > { %s398_s15 = sshll.u32 %s2982_s9, 4  ;;  %s2983_s25 = smov 4   ;;  %s399_s15 = int_to_ptr.hbm [resolvable:$true] %s398_s15 }
  0x38   : > { %1880 = dma.hbm_to_vmem [thread:$0]  (!%p2452_p5), %s365_s10, 256, %s367_s12, [#allocation13], %s2984_s16, %s2984_s16, %s2983_s25  }
  0x39   : > { %s400_s17 = sshll.u32 %s2333_s28, 4  ;;  %s426_s22 = scalar_lea.hbm %s2985_s0, %s2507_s3  ;;  %s401_s17 = int_to_ptr.vmem [resolvable:$true] %s400_s17 }
  0x3a   : > { %1886 = dma.hbm_to_vmem [thread:$0]  (!%p2452_p5), %s399_s15, 256, %s401_s17, [#allocation16], %s2984_s16, %s2984_s16, %s2983_s25  }
  0x3b   : > { %s428_s1 = sshll.u32 %s426_s22, 4  ;;  %s430_s5 = sshll.u32 %s421_s13, 4  ;;  %s429_s1 = int_to_ptr.hbm [resolvable:$true] %s428_s1  ;;  %s431_s5 = int_to_ptr.vmem [resolvable:$true] %s430_s5 }
  0x3c   : > { %s2986_s9 = sand.u32 1, %s2314_s19   ;;  %s466_s21 = scalar_lea.hbm %s2934_s2, %s2507_s3 }
  0x3d   : > { %s418_s10 = scalar_lea.sflag [#allocation7], %s2986_s9  ;;  %s468_s26 = sshll.u32 %s466_s21, 4  ;;  %s469_s26 = int_to_ptr.hbm [resolvable:$true] %s468_s26 }
  0x3e   : > { %1890 = dma.hbm_to_vmem [thread:$0]  (!%p2515_p8), %s429_s1, 128, %s431_s5, %s418_s10  }
  0x3f   : > { %s461_s0 = scalar_lea.vmem [#allocation11], %s2511_s29  ;;  %479 = sbr.rel (%p2444_p3) target bundleno = 1300 (0x514), region = 64 }
  0x40   : > { %s470_s30 = sshll.u32 %s461_s0, 4  ;;  %s2562_s15 = sand.u32 (!%p2444_p3), 1, %s2310_s18   ;;  %s471_s30 = int_to_ptr.vmem [resolvable:$true] %s470_s30 }
  0x41   : > { %1896 = dma.hbm_to_vmem [thread:$0]  (!%p2515_p8), %s469_s26, 128, %s471_s30, %s438_s24  }
  0x42   : > { %s2565_s5 = sshll.u32 (!%p2444_p3), %s2562_s15, 3  ;;  %s482_s3 = scalar_lea.sflag (!%p2444_p3), [#allocation7], %s2562_s15 }
  0x43   : > { %s485_s9 = scalar_lea.vmem (!%p2444_p3), [#allocation6], %s2565_s5 }
  0x44   : > { %2285 = dma.done.wait (%p2489_p0), %s482_s3, 128  }
  0x45   : > { %2287 = vsyncadd (%p2489_p0), %s482_s3, 4294967168  ;;  %s491_s0 = sand.u32 1, %s2436_s23   ;;  %s495_s27 = scalar_lea.vmem [#allocation9], %s2565_s5 }
  0x46   : > { %s492_s7 = scalar_lea.sflag [#allocation10], %s491_s0 }
  0x47   : > { %2289 = dma.done.wait (%p2489_p0), %s492_s7, 256  }
  0x48   : > { %2291 = vsyncadd (%p2489_p0), %s492_s7, 4294967040  ;;  %s505_s24 = scalar_lea.vmem [#allocation11], %s2565_s5 }
  0x49   : > { %2293 = dma.done.wait (%p74_p1), [#allocation13], 512  }
  0x4a   : > { %2295 = vsyncadd (%p74_p1), [#allocation13], 4294966784 }
  0x4b   : > { %2297 = dma.done.wait (%p74_p1), [#allocation16], 512  }
  0x4c   : > { %2299 = vsyncadd (%p74_p1), [#allocation16], 4294966784  ;;  %v1843_v0 = vld [vmem:[#allocation12 + $0x8] sm:$0xff]  ;;  %v1845_v1 = vld [vmem:[#allocation14 + $0x8] sm:$0xff]  ;;  %vm602_vm0 = vcmask 261120   ;;  %s2334_s16 = smov 104  }
  0x4d   : > { %v1842_v2 = vld [vmem:[#allocation12] sm:$0xff]  ;;  %v1844_v3 = vld [vmem:[#allocation14] sm:$0xff]  ;;  %612 = vmatpush.bf16.msra.mxu0 %v1843_v0  ;;  %797 = vmatpush.bf16.msra.mxu1 %v1845_v1  ;;  %v1847_v8 = vld [vmem:[#allocation15 + $0x8] sm:$0xff]  ;;  %s2335_s17 = smov 120   ;;  %s2336_s22 = smov 112   ;;  %vm630_vm1 = vcmask 1047556  }
  0x4e   : > { %v580_v4 = vld [vmem:[%s485_s9] sm:$0xff]  ;;  %v763_v5 = vld [vmem:[%s495_s27] sm:$0xff]  ;;  %833 = vmatpush.bf16.msra.mxu2 %v1847_v8  ;;  %v2337_v25 = vmov 1983009808   ;;  %v2338_v41 = vmov 1934713408  }
  0x4f   : > { %v581_v6 = vpack.c.bf16 %v580_v4, %v580_v4  ;;  %v764_v7 = vpack.c.bf16 %v763_v5, %v763_v5  ;;  %v1846_v9 = vld [vmem:[#allocation15] sm:$0xff]  ;;  %v765_v10 = vld [vmem:[%s505_s24] sm:$0xff]  ;;  %v635_v26 = vunpack.c.l.s4 %v2337_v25  ;;  %v659_v42 = vunpack.c.l.s4 %v2338_v41  ;;  %s2342_s10 = smov 24   ;;  %s2343_s12 = smov 16  }
  0x50   : > { %v766_v11 = vpack.c.bf16 %v765_v10, %v765_v10  ;;  %v1994_v12 = vld [vmem:[%s2936_s4] ss:$0 sm:$0xff]  ;;  %vm744_vm2 = vcmask 60416   ;;  %vm758_vm3 = vcmask 64512   ;;  %vm749_vm4 = vcmask 7168   ;;  %s2344_s28 = smov 8  }
  0x51   : > { %613 = vmatpush.bf16.msra.mxu0 %v1842_v2  ;;  %798 = vmatpush.bf16.msra.mxu1 %v1844_v3  ;;  %v1995_v13 = vld [vmem:[%s2938_s6] ss:$0 sm:$0xff]  ;;  %v2605_v36 = vunpack.c.0.s8 %v635_v26  ;;  %v2617_v53 = vunpack.c.0.s8 %v659_v42  ;;  %vm1298_vm5 = vcmask 1043456   ;;  %vm1546_vm6 = vcmask 130048   ;;  %s1839_s21 = sshll.u32 %s2318_s20, 3  ;;  %s2988_s27 = sld [smem:[#allocation37_spill]] }
  0x52   : > { %834 = vmatpush.bf16.msra.mxu2 %v1846_v9  ;;  %v1996_v21 = vld [vmem:[%s2940_s8] ss:$0 sm:$0xff]  ;;  %vm1548_vm7 = vcmask 195584   ;;  %s1600_s9 = scalar_lea.hbm %s2943_s11, %s1839_s21  ;;  %s574_s24 = scalar_lea.vmem [#allocation18], %s2565_s5 }
  0x53   : > { %s1602_s23 = sshll.u32 %s574_s24, 4  ;;  %s1604_s14 = sshll.u32 %s1600_s9, 4  ;;  %s1603_s23 = int_to_ptr.vmem [resolvable:$true] %s1602_s23  ;;  %s1605_s14 = int_to_ptr.hbm [resolvable:$true] %s1604_s14 }
  0x54   : > { %1802 = vmatmul.msk.bf16.vlgmr.msra.gmra.mxu0 %vm602_vm0, %v581_v6  ;;  %1811 = vmatmul.msk.bf16.vlgmr.msra.gmra.mxu1 %vm602_vm0, %v764_v7  ;;  %s1589_s29 = scalar_lea.sflag [#allocation8], %s2562_s15  ;;  %s2246_s20 = sshra.s32 %s1605_s14, 4  ;;  %s2247_s20 = int_to_ptr.hbm [resolvable:$true] %s2246_s20 }
  0x55   : > { %1820 = vmatmul.msk.bf16.vlgmr.msra.gmra.mxu2 %vm602_vm0, %v766_v11  ;;  %s2248_s25 = scalar_lea.hbm %s2247_s20, 8  ;;  %s2252_s5 = scalar_lea.hbm %s2943_s11, 16 }
  0x56   : > { %p2249_p1 = scmp.ne.s32.totalorder %s2247_s20, %s2248_s25  ;;  %p2253_p10 = scmp.lt.s32.totalorder %s2247_s20, %s2943_s11 }
  0x57   : > { %p2254_p11 = scmp.lt.s32.totalorder %s2252_s5, %s2248_s25 }
  0x58   : > { %p2250_p3 = pnand %p2249_p1, %p2493_p2 }
  0x59   : > { %p2255_p12 = por %p2254_p11, %p2253_p10 }
  0x5a   : > { %p2251_p5 = pneg %p2250_p3 }
  0x5c   : > { %p2256_p13 = pnand %p2255_p12, %p2251_p5 }
  0xd1   : > { %v615_v14 = vpop.f32.mrf.mxu0  ;;  %v800_v15 = vpop.f32.mrf.mxu1 }
  0xd2   : > { %v616_v16 = vadd.f32 %v1994_v12, %v615_v14  ;;  %v801_v17 = vadd.f32 %v1995_v13, %v800_v15 }
  0xd4   : > { %v1986_v18 = vpack.i.bf16 %v801_v17, %v616_v16  ;;  %v853_v46 = vrot.slane %v801_v17, 4  ;;  %v632_v48 = vrot.slane %v616_v16, 4 }
  0xd6   : > { %1987 = vrot.lane.b32.xlu1 %v1986_v18, %s2334_s16  ;;  %1977 = vrot.lane.b32.xlu0 %v1986_v18, %s2335_s17 }
  0xd8   : > { %v836_v22 = vpop.f32.mrf.mxu2 }
  0xd9   : > { %v617_v19 = vpop.f32.mrf.mxu0  ;;  %v802_v20 = vpop.f32.mrf.mxu1  ;;  %v2602_v23 = vadd.f32 %v1996_v21, %v836_v22 }
  0xdb   : > { %966 = vrot.lane.b32.xlu2 %v2602_v23, %s2335_s17 }
  0xde   : > { %1982 = vrot.lane.b32.xlu0 %v1986_v18, %s2336_s22 }
  0xe0   : > { %v838_v43 = vpop.f32.mrf.mxu2 }
  0xe3   : > { %969 = vrot.lane.b32.xlu2 %v2602_v23, %s2336_s22 }
 0x148   : > { %v1988_v24 = vpop.permute.xlu1 %1987  ;;  %v1978_v27 = vpop.permute.xlu0 %1977 }
 0x149   : > { %v1990_v28 = vunpack.i.h.bf16 %v1988_v24  ;;  %v1989_v29 = vunpack.i.l.bf16 %v1988_v24  ;;  %v1980_v30 = vunpack.i.h.bf16 %v1978_v27  ;;  %v1979_v31 = vunpack.i.l.bf16 %v1978_v27 }
 0x14b   : > { %v863_v32 = vrot.slane %v1990_v28, 4  ;;  %v642_v33 = vrot.slane %v1989_v29, 4  ;;  %v865_v34 = vrot.slane %v1980_v30, 4  ;;  %v644_v35 = vrot.slane %v1979_v31, 4 }
 0x14d   : > { %v864_v37 = vsel %vm630_vm1, %v863_v32, %v1980_v30  ;;  %v645_v38 = vsel %vm630_vm1, %v1989_v29, %v644_v35  ;;  %v866_v39 = vsel %vm630_vm1, %v1990_v28, %v865_v34  ;;  %v643_v40 = vsel %vm630_vm1, %v642_v33, %v1979_v31 }
 0x14e   : > { %v870_v44 = vperm.slane %v864_v37, %v2605_v36  ;;  %v653_v45 = vperm.slane %v645_v38, %v2605_v36  ;;  %v874_v49 = vperm.slane %v866_v39, %v2605_v36  ;;  %v649_v50 = vperm.slane %v643_v40, %v2605_v36 }
 0x150   : > { %v1983_v47 = vpop.permute.xlu0 %1982  ;;  %v875_v58 = vrot.slane %v870_v44, 4  ;;  %v666_v59 = vrot.slane %v653_v45, 4  ;;  %v887_v62 = vrot.slane %v874_v49, 4  ;;  %v654_v63 = vrot.slane %v649_v50, 4 }
 0x151   : > { %v1985_v51 = vunpack.i.h.bf16 %v1983_v47  ;;  %v1984_v52 = vunpack.i.l.bf16 %v1983_v47 }
 0x153   : > { %v850_v54 = vrot.slane %v1985_v51, 4  ;;  %v854_v55 = vsel %vm630_vm1, %v1985_v51, %v853_v46  ;;  %v629_v56 = vrot.slane %v1984_v52, 4  ;;  %v633_v57 = vsel %vm630_vm1, %v1984_v52, %v632_v48 }
 0x154   : > { %v862_v60 = vperm.slane %v854_v55, %v2605_v36  ;;  %v641_v61 = vperm.slane %v633_v57, %v2605_v36 }
 0x155   : > { %v852_v0 = vsel %vm630_vm1, %v850_v54, %v801_v17  ;;  %v631_v1 = vsel %vm630_vm1, %v629_v56, %v616_v16 }
 0x156   : > { %v858_v2 = vperm.slane %v852_v0, %v2605_v36  ;;  %v889_v3 = vrot.slane %v862_v60, 4  ;;  %v637_v4 = vperm.slane %v631_v1, %v2605_v36  ;;  %v667_v5 = vsel %vm630_vm1, %v666_v59, %v641_v61 }
 0x157   : > { %v668_v6 = vrot.slane %v641_v61, 4  ;;  %v673_v7 = vperm.slane %v667_v5, %v2617_v53  ;;  %v888_v8 = vsel %vm630_vm1, %v887_v62, %v862_v60 }
 0x158   : > { %v877_v9 = vrot.slane %v858_v2, 4  ;;  %v655_v10 = vsel %vm630_vm1, %v654_v63, %v637_v4  ;;  %v656_v11 = vrot.slane %v637_v4, 4  ;;  %v876_v12 = vsel %vm630_vm1, %v875_v58, %v858_v2 }
 0x159   : > { %v661_v13 = vperm.slane %v655_v10, %v2617_v53  ;;  %v669_v14 = vsel %vm630_vm1, %v653_v45, %v668_v6  ;;  %v682_v15 = vrot.slane %v673_v7, 4  ;;  %v882_v16 = vperm.slane %v876_v12, %v2617_v53 }
 0x15a   : > { %v657_v17 = vsel %vm630_vm1, %v649_v50, %v656_v11  ;;  %v677_v18 = vperm.slane %v669_v14, %v2617_v53  ;;  %v878_v19 = vsel %vm630_vm1, %v870_v44, %v877_v9  ;;  %v890_v20 = vsel %vm630_vm1, %v874_v49, %v889_v3 }
 0x15b   : > { %v665_v21 = vperm.slane %v657_v17, %v2617_v53  ;;  %v678_v22 = vrot.slane %v661_v13, 4  ;;  %v886_v24 = vperm.slane %v878_v19, %v2617_v53  ;;  %v683_v25 = vsel %vm630_vm1, 0.0, %v682_v15 }
 0x15c   : > { %v684_v26 = vrot.slane %v677_v18, 4  ;;  %v894_v27 = vperm.slane %v888_v8, %v2617_v53  ;;  %v898_v28 = vperm.slane %v890_v20, %v2617_v53  ;;  %v899_v31 = vrot.slane %v882_v16, 4 }
 0x15d   : > { %v679_v29 = vsel %vm630_vm1, 0.0, %v678_v22  ;;  %v680_v30 = vrot.slane %v665_v21, 4  ;;  %v901_v32 = vrot.slane %v886_v24, 4 }
 0x15e   : > { %v685_v33 = vsel %vm630_vm1, 0.0, %v684_v26  ;;  %v697_v34 = vsel %vm630_vm1, %v684_v26, %v673_v7  ;;  %v903_v35 = vrot.slane %v894_v27, 4  ;;  %v905_v37 = vrot.slane %v898_v28, 4 }
 0x15f   : > { %v681_v38 = vsel %vm630_vm1, 0.0, %v680_v30  ;;  %v686_v39 = vsel %vm630_vm1, %v680_v30, %v661_v13  ;;  %v701_v40 = vperm.slane %v697_v34, %v2605_v36  ;;  %v702_v41 = vrot.slane %v685_v33, 4 }
 0x160   : > { %v690_v42 = vperm.slane %v686_v39, %v2605_v36  ;;  %v691_v43 = vrot.slane %v681_v38, 4  ;;  %v904_v44 = vsel %vm630_vm1, 0.0, %v903_v35  ;;  %v906_v45 = vsel %vm630_vm1, 0.0, %v905_v37 }
 0x161   : > { %v703_v46 = vsel %vm630_vm1, %v702_v41, %v683_v25  ;;  %v722_v47 = vrot.slane %v701_v40, 4  ;;  %v918_v48 = vsel %vm630_vm1, %v905_v37, %v894_v27  ;;  %v923_v49 = vrot.slane %v906_v45, 4 }
 0x162   : > { %v692_v50 = vsel %vm630_vm1, %v691_v43, %v679_v29  ;;  %v707_v51 = vperm.slane %v703_v46, %v2605_v36  ;;  %v710_v52 = vrot.slane %v690_v42, 4  ;;  %v900_v54 = vsel %vm630_vm1, 0.0, %v899_v31 }
 0x163   : > { %v696_v55 = vperm.slane %v692_v50, %v2605_v36  ;;  %v902_v56 = vsel %vm630_vm1, 0.0, %v901_v32  ;;  %v907_v57 = vsel %vm630_vm1, %v901_v32, %v882_v16  ;;  %v922_v58 = vperm.slane %v918_v48, %v2605_v36 }
 0x164   : > { %v720_v59 = vrot.slane %v707_v51, 4  ;;  %v723_v60 = vsel %vm630_vm1, %v707_v51, %v722_v47  ;;  %v911_v61 = vperm.slane %v907_v57, %v2605_v36  ;;  %v912_v62 = vrot.slane %v902_v56, 4 }
 0x165   : > { %v708_v63 = vrot.slane %v696_v55, 4  ;;  %v711_v0 = vsel %vm630_vm1, %v696_v55, %v710_v52  ;;  %v731_v1 = vperm.slane %v723_v60, %v2617_v53  ;;  %v924_v2 = vsel %vm630_vm1, %v923_v49, %v904_v44 }
 0x166   : > { %v719_v3 = vperm.slane %v711_v0, %v2617_v53  ;;  %v721_v4 = vsel %vm630_vm1, %v720_v59, %v701_v40  ;;  %v913_v5 = vsel %vm630_vm1, %v912_v62, %v900_v54  ;;  %v928_v6 = vperm.slane %v924_v2, %v2605_v36 }
 0x167   : > { %v709_v7 = vsel %vm630_vm1, %v708_v63, %v690_v42  ;;  %v727_v8 = vperm.slane %v721_v4, %v2617_v53  ;;  %v736_v9 = vrot.slane %v731_v1, 4  ;;  %v917_v10 = vperm.slane %v913_v5, %v2605_v36 }
 0x168   : > { %v715_v11 = vperm.slane %v709_v7, %v2617_v53  ;;  %v738_v12 = vrot.slane %v719_v3, 4  ;;  %v931_v13 = vrot.slane %v911_v61, 4  ;;  %v943_v14 = vrot.slane %v922_v58, 4 }
 0x169   : > { %v732_v15 = vrot.slane %v727_v8, 4  ;;  %v737_v16 = vsel %vm630_vm1, %v736_v9, %v719_v3  ;;  %v929_v17 = vrot.slane %v917_v10, 4  ;;  %v941_v18 = vrot.slane %v928_v6, 4  ;;  %v967_v9 = vpop.permute.xlu2 %966 }
 0x16a   : > { %v734_v19 = vrot.slane %v715_v11, 4  ;;  %v739_v20 = vsel %vm630_vm1, %v731_v1, %v738_v12  ;;  %v742_v21 = vpack.c.bf16 %v737_v16, %v737_v16  ;;  %v932_v22 = vsel %vm630_vm1, %v917_v10, %v931_v13 }
 0x16b   : > { %v733_v24 = vsel %vm630_vm1, %v732_v15, %v715_v11  ;;  %v743_v25 = vpack.c.bf16 %v739_v20, %v739_v20  ;;  %v940_v26 = vperm.slane %v932_v22, %v2617_v53  ;;  %v944_v27 = vsel %vm630_vm1, %v928_v6, %v943_v14 }
 0x16c   : > { %v735_v28 = vsel %vm630_vm1, %v727_v8, %v734_v19  ;;  %v740_v29 = vpack.c.bf16 %v733_v24, %v733_v24  ;;  %747 = vst.msk [vmem:[#allocation2 + $0x8] sm:$0xf] %vm744_vm2, %v742_v21  ;;  %v952_v30 = vperm.slane %v944_v27, %v2617_v53  ;;  %v930_v31 = vsel %vm630_vm1, %v929_v17, %v911_v61 }
 0x16d   : > { %v741_v32 = vpack.c.bf16 %v735_v28, %v735_v28  ;;  %748 = vst.msk [vmem:[#allocation2 + $0xc] sm:$0xf] %vm744_vm2, %v743_v25  ;;  %v936_v33 = vperm.slane %v930_v31, %v2617_v53  ;;  %v942_v34 = vsel %vm630_vm1, %v941_v18, %v922_v58  ;;  %v959_v35 = vrot.slane %v940_v26, 4 }
 0x16e   : > { %745 = vst.msk [vmem:[#allocation2] sm:$0xf] %vm744_vm2, %v740_v29  ;;  %v957_v37 = vrot.slane %v952_v30, 4  ;;  %v948_v38 = vperm.slane %v942_v34, %v2617_v53  ;;  %v2339_v62 = vmov -inf   ;;  %v2340_v7 = vmov 0  }
 0x16f   : > { %746 = vst.msk [vmem:[#allocation2 + $0x4] sm:$0xf] %vm744_vm2, %v741_v32  ;;  %v960_v39 = vsel %vm630_vm1, %v952_v30, %v959_v35  ;;  %v955_v40 = vrot.slane %v936_v33, 4  ;;  %1992 = vset.pattern.permute.xlu0 %v2340_v7  ;;  %1993 = vset.pattern.permute.xlu2 %v2340_v7  ;;  %v2341_v8 = vmov 0.0   ;;  %v977_v21 = vrot.slane %v2602_v23, 4 }
 0x170   : > { %v958_v41 = vsel %vm630_vm1, %v957_v37, %v940_v26  ;;  %v953_v42 = vrot.slane %v948_v38, 4  ;;  %v964_v43 = vpack.c.bf16 %v960_v39, %v960_v39  ;;  %752 = vst.msk [vmem:[#allocation3 + $0x10] sm:$0xff] %vm749_vm4, %v2339_v62  ;;  %1991 = vset.pattern.permute.xlu1 %v2340_v7 }
 0x171   : > { %v963_v44 = vpack.c.bf16 %v958_v41, %v958_v41  ;;  %v956_v45 = vsel %vm630_vm1, %v948_v38, %v955_v40  ;;  %750 = vst.msk [vmem:[#allocation3] sm:$0xff] %vm749_vm4, %v2339_v62  ;;  %v970_v10 = vpop.permute.xlu2 %969 }
 0x172   : > { %v954_v46 = vsel %vm630_vm1, %v953_v42, %v936_v33  ;;  %v1155_v47 = vsel %vm758_vm3, %v964_v43, 0  ;;  %v962_v48 = vpack.c.bf16 %v956_v45, %v956_v45  ;;  %751 = vst.msk [vmem:[#allocation3 + $0x8] sm:$0xff] %vm749_vm4, %v2339_v62  ;;  %v975_v25 = vrot.slane %v970_v10, 4 }
 0x173   : > { %v1136_v49 = vsel %vm758_vm3, %v963_v44, 0  ;;  %v961_v50 = vpack.c.bf16 %v954_v46, %v954_v46  ;;  %1164 = vmatpush.bf16.xpose.msrb.mxu2 %v1155_v47  ;;  %v1091_v55 = vld [vmem:[#allocation2 + $0x8] sm:$0xf]  ;;  %753 = vst.msk [vmem:[#allocation3 + $0x18] sm:$0xff] %vm749_vm4, %v2339_v62  ;;  %v978_v28 = vsel %vm630_vm1, %v970_v10, %v977_v21  ;;  %v989_v33 = vrot.slane %v967_v9, 4 }
 0x174   : > { %1145 = vmatpush.bf16.xpose.msrb.mxu1 %v1136_v49  ;;  %v1117_v51 = vsel %vm758_vm3, %v962_v48, 0  ;;  %v1092_v54 = vld [vmem:[#allocation2 + $0xc] sm:$0xf]  ;;  %757 = vst.msk [vmem:[#allocation4 + $0x18] sm:$0xff] %vm749_vm4, %v2341_v8  ;;  %v976_v31 = vsel %vm630_vm1, %v975_v25, %v2602_v23  ;;  %v986_v32 = vperm.slane %v978_v28, %v2605_v36 }
 0x175   : > { %v1098_v52 = vsel %vm758_vm3, %v961_v50, 0  ;;  %1126 = vmatpush.bf16.xpose.msrb.mxu0 %v1117_v51  ;;  %v1089_v57 = vld [vmem:[#allocation2] sm:$0xf]  ;;  %754 = vst.msk [vmem:[#allocation4] sm:$0xff] %vm749_vm4, %v2341_v8  ;;  %v982_v34 = vperm.slane %v976_v31, %v2605_v36 }
 0x176   : > { %1107 = vmatpush.bf16.xpose.msra.mxu3 %v1098_v52  ;;  %v1090_v56 = vld [vmem:[#allocation2 + $0x4] sm:$0xf]  ;;  %755 = vst.msk [vmem:[#allocation4 + $0x8] sm:$0xff] %vm749_vm4, %v2341_v8  ;;  %v1013_v39 = vrot.slane %v986_v32, 4 }
 0x177   : > { %756 = vst.msk [vmem:[#allocation4 + $0x10] sm:$0xff] %vm749_vm4, %v2341_v8  ;;  %v2733_v11 = vld [vmem:[#allocation3 + $0x10] sm:$0xff]  ;;  %v1001_v42 = vrot.slane %v982_v34, 4 }
 0x178   : > { %759 = vst.msk [vmem:[#allocation5] sm:$0xff] %vm758_vm3, %v2341_v8  ;;  %v2754_v20 = vld [vmem:[#allocation3] sm:$0xff] }
 0x179   : > { %760 = vst.msk [vmem:[#allocation5 + $0x8] sm:$0xff] %vm758_vm3, %v2341_v8  ;;  %v2735_v12 = vld [vmem:[#allocation3 + $0x8] sm:$0xff] }
 0x17a   : > { %1824 = vmatmul.msk.bf16.vlgmr.msrb.gmra.mxu2 %vm758_vm3, %v1092_v54  ;;  %761 = vst.msk [vmem:[#allocation5 + $0x10] sm:$0xff] %vm758_vm3, %v2341_v8  ;;  %v2752_v19 = vld [vmem:[#allocation3 + $0x18] sm:$0xff] }
 0x17b   : > { %1823 = vmatmul.msk.bf16.vlgmr.msrb.gmra.mxu1 %vm758_vm3, %v1091_v55  ;;  %762 = vst.msk [vmem:[#allocation5 + $0x18] sm:$0xff] %vm758_vm3, %v2341_v8 }
 0x17c   : > { %1822 = vmatmul.msk.bf16.vlgmr.msrb.gmra.mxu0 %vm758_vm3, %v1090_v56 }
 0x17d   : > { %1821 = vmatmul.msk.bf16.vlgmr.msra.gmra.mxu3 %vm758_vm3, %v1089_v57 }
 0x1f8   : > { %v2703_v58 = vpop.f32.mrf.mxu1 }
 0x1f9   : > { %v1180_v59 = vsel %vm758_vm3, %v2703_v58, -inf  ;;  %v2707_v60 = vpop.f32.mrf.mxu0 }
 0x1fa   : > { %1181 = vmax.xlane.f32.xlu2 %v1180_v59  ;;  %v1177_v61 = vsel %vm758_vm3, %v2707_v60, -inf }
 0x1fb   : > { %1178 = vmax.xlane.f32.xlu0 %v1177_v61 }
 0x1fd   : > { %v2713_v63 = vpop.f32.mrf.mxu2 }
 0x1fe   : > { %v1183_v0 = vsel %vm758_vm3, %v2713_v63, -inf }
 0x200   : > { %v2719_v1 = vpop.f32.mrf.mxu3  ;;  %v1149_v2 = vpop.f32.mrf.mxu1 }
 0x201   : > { %v1174_v3 = vsel %vm758_vm3, %v2719_v1, -inf  ;;  %v1130_v4 = vpop.f32.mrf.mxu0 }
 0x202   : > { %1184 = vmax.xlane.f32.xlu2 %v1183_v0  ;;  %1175 = vmax.xlane.f32.xlu1 %v1174_v3 }
 0x205   : > { %v1168_v5 = vpop.f32.mrf.mxu2 }
 0x208   : > { %v1111_v6 = vpop.f32.mrf.mxu3 }
 0x21a   : > { %972 = vrot.lane.b32.xlu2 %v2602_v23, %s2334_s16 }
 0x26d   : > { %v1182_v13 = vpop.xlane.xlu2 %1181 }
 0x26e   : > { %v2738_v14 = vmax.f32 %v2733_v11, %v1182_v13  ;;  %v1179_v15 = vpop.xlane.xlu0 %1178 }
 0x26f   : > { %v2741_v16 = vmax.f32 %v2735_v12, %v1179_v15 }
 0x270   : > { %v1192_v17 = vsub.f32 %v2733_v11, %v2738_v14  ;;  %1382 = vst.msk [vmem:[#allocation3 + $0x10] sm:$0xff] %vm749_vm4, %v2738_v14  ;;  %1214 = vperm.xlu0 %1992, %v2738_v14   ;;  %v1236_v11 = vld [vmem:[#allocation4 + $0x10] sm:$0xff] }
 0x271   : > { %v1191_v18 = vsub.f32 %v2735_v12, %v2741_v16  ;;  %1381 = vst.msk [vmem:[#allocation3 + $0x8] sm:$0xff] %vm749_vm4, %v2741_v16  ;;  %v1266_v12 = vld [vmem:[#allocation5 + $0x18] sm:$0xff] }
 0x275   : > { %v1185_v22 = vpop.xlane.xlu2 %1184  ;;  %v1176_v24 = vpop.xlane.xlu1 %1175 }
 0x276   : > { %v2758_v26 = vmax.f32 %v2752_v19, %v1185_v22  ;;  %v2761_v27 = vmax.f32 %v2754_v20, %v1176_v24 }
 0x278   : > { %v1193_v29 = vsub.f32 %v2752_v19, %v2758_v26  ;;  %1383 = vst.msk [vmem:[#allocation3 + $0x18] sm:$0xff] %vm749_vm4, %v2758_v26  ;;  %v1190_v30 = vsub.f32 %v2754_v20, %v2761_v27  ;;  %1219 = vperm.xlu2 %1993, %v2758_v26   ;;  %1204 = vperm.xlu1 %1991, %v2761_v27  }
 0x279   : > { %1380 = vst.msk [vmem:[#allocation3] sm:$0xff] %vm749_vm4, %v2761_v27 }
 0x27d   : > { %v973_v35 = vpop.permute.xlu2 %972 }
 0x27e   : > { %v987_v37 = vrot.slane %v973_v35, 4  ;;  %v990_v38 = vsel %vm630_vm1, %v973_v35, %v989_v33 }
 0x27f   : > { %v998_v40 = vperm.slane %v990_v38, %v2605_v36 }
 0x280   : > { %v988_v41 = vsel %vm630_vm1, %v987_v37, %v967_v9  ;;  %1209 = vperm.xlu2 %1993, %v2741_v16  }
 0x281   : > { %v994_v43 = vperm.slane %v988_v41, %v2605_v36  ;;  %v1011_v23 = vrot.slane %v998_v40, 4  ;;  %v1014_v44 = vsel %vm630_vm1, %v998_v40, %v1013_v39 }
 0x282   : > { %v1022_v45 = vperm.slane %v1014_v44, %v2617_v53 }
 0x283   : > { %v999_v46 = vrot.slane %v994_v43, 4  ;;  %v1002_v47 = vsel %vm630_vm1, %v994_v43, %v1001_v42  ;;  %v1012_v48 = vsel %vm630_vm1, %v1011_v23, %v986_v32 }
 0x284   : > { %v1010_v49 = vperm.slane %v1002_v47, %v2617_v53  ;;  %v1018_v50 = vperm.slane %v1012_v48, %v2617_v53  ;;  %v1029_v51 = vrot.slane %v1022_v45, 4 }
 0x285   : > { %v1000_v52 = vsel %vm630_vm1, %v999_v46, %v982_v34 }
 0x286   : > { %v1006_v54 = vperm.slane %v1000_v52, %v2617_v53  ;;  %v1025_v55 = vrot.slane %v1010_v49, 4  ;;  %v1027_v56 = vrot.slane %v1018_v50, 4  ;;  %v1030_v57 = vsel %vm630_vm1, 0.0, %v1029_v51 }
 0x287   : > { %v1042_v59 = vsel %vm630_vm1, %v1029_v51, %v1018_v50  ;;  %v1047_v61 = vrot.slane %v1030_v57, 4 }
 0x288   : > { %v1023_v62 = vrot.slane %v1006_v54, 4  ;;  %v1026_v0 = vsel %vm630_vm1, 0.0, %v1025_v55  ;;  %v1028_v2 = vsel %vm630_vm1, 0.0, %v1027_v56  ;;  %v1031_v3 = vsel %vm630_vm1, %v1025_v55, %v1006_v54 }
 0x289   : > { %v1036_v4 = vrot.slane %v1026_v0, 4  ;;  %v1046_v5 = vperm.slane %v1042_v59, %v2605_v36  ;;  %v1048_v6 = vsel %vm630_vm1, %v1047_v61, %v1028_v2  ;;  %v1035_v7 = vperm.slane %v1031_v3, %v2605_v36 }
 0x28a   : > { %v1024_v8 = vsel %vm630_vm1, 0.0, %v1023_v62  ;;  %v1052_v9 = vperm.slane %v1048_v6, %v2605_v36 }
 0x28b   : > { %v1067_v10 = vrot.slane %v1046_v5, 4  ;;  %v1037_v13 = vsel %vm630_vm1, %v1036_v4, %v1024_v8  ;;  %v1055_v15 = vrot.slane %v1035_v7, 4 }
 0x28c   : > { %v1041_v21 = vperm.slane %v1037_v13, %v2605_v36  ;;  %v1065_v22 = vrot.slane %v1052_v9, 4 }
 0x28d   : > { %v1068_v24 = vsel %vm630_vm1, %v1052_v9, %v1067_v10 }
 0x28e   : > { %v1056_v25 = vsel %vm630_vm1, %v1041_v21, %v1055_v15  ;;  %v1076_v28 = vperm.slane %v1068_v24, %v2617_v53  ;;  %v1053_v31 = vrot.slane %v1041_v21, 4  ;;  %v1066_v32 = vsel %vm630_vm1, %v1065_v22, %v1046_v5 }
 0x28f   : > { %v1064_v33 = vperm.slane %v1056_v25, %v2617_v53  ;;  %v1072_v34 = vperm.slane %v1066_v32, %v2617_v53  ;;  %v1198_v22 = vmul.f32 1.442695, %v1192_v17  ;;  %v1196_v24 = vmul.f32 1.442695, %v1191_v18  ;;  %v1237_v32 = vld [vmem:[#allocation4 + $0x18] sm:$0xff] }
 0x290   : > { %v1081_v35 = vrot.slane %v1076_v28, 4  ;;  %v1054_v37 = vsel %vm630_vm1, %v1053_v31, %v1035_v7 }
 0x291   : > { %v1060_v38 = vperm.slane %v1054_v37, %v2617_v53  ;;  %v1077_v39 = vrot.slane %v1072_v34, 4  ;;  %v1083_v40 = vrot.slane %v1064_v33, 4  ;;  %v1235_v37 = vld [vmem:[#allocation4 + $0x8] sm:$0xff] }
 0x292   : > { %v1082_v41 = vsel %vm630_vm1, %v1081_v35, %v1064_v33 }
 0x293   : > { %v1087_v42 = vpack.c.bf16 %v1082_v41, %v1082_v41  ;;  %v1078_v43 = vsel %vm630_vm1, %v1077_v39, %v1060_v38  ;;  %v1079_v23 = vrot.slane %v1060_v38, 4  ;;  %v1084_v44 = vsel %vm630_vm1, %v1076_v28, %v1083_v40  ;;  %v1234_v38 = vld [vmem:[#allocation4] sm:$0xff] }
 0x294   : > { %v1085_v45 = vpack.c.bf16 %v1078_v43, %v1078_v43  ;;  %v1088_v46 = vpack.c.bf16 %v1084_v44, %v1084_v44 }
 0x295   : > { %v1338_v47 = vsel %vm1298_vm5, %v1087_v42, 0  ;;  %v1080_v48 = vsel %vm630_vm1, %v1072_v34, %v1079_v23 }
 0x296   : > { %1347 = vmatpush.bf16.msra.mxu1 %v1338_v47  ;;  %v1300_v49 = vsel %vm1298_vm5, %v1085_v45, 0  ;;  %v1357_v50 = vsel %vm1298_vm5, %v1088_v46, 0  ;;  %v1086_v51 = vpack.c.bf16 %v1080_v48, %v1080_v48 }
 0x297   : > { %1309 = vmatpush.bf16.msrb.mxu3 %v1300_v49  ;;  %1366 = vmatpush.bf16.msra.mxu2 %v1357_v50 }
 0x298   : > { %v1319_v52 = vsel %vm1298_vm5, %v1086_v51, 0 }
 0x299   : > { %1328 = vmatpush.bf16.msra.mxu0 %v1319_v52 }
 0x2d2   : > { %v1220_v54 = vpop.permute.xlu2 %1219 }
 0x2d3   : > { %v1225_v55 = vsub.f32 %v2713_v63, %v1220_v54  ;;  %v1263_v54 = vld [vmem:[#allocation5] sm:$0xff] }
 0x2d5   : > { %v1232_v56 = vmul.f32 1.442695, %v1225_v55 }
 0x2d7   : > { %1998 = vpow2.f32 %v1232_v56 }
 0x2da   : > { %v1210_v57 = vpop.permute.xlu2 %1209 }
 0x2db   : > { %v1223_v59 = vsub.f32 %v2707_v60, %v1210_v57  ;;  %v1200_v60 = vmul.f32 1.442695, %v1193_v29 }
 0x2dd   : > { %v1999_v61 = vpop.eup %1998  ;;  %v1228_v62 = vmul.f32 1.442695, %v1223_v59 }
 0x2de   : > { %v1294_v0 = vpack.c.bf16 %v1999_v61, %v1999_v61  ;;  %v1251_v2 = vsel %vm758_vm3, %v1999_v61, 0.0 }
 0x2df   : > { %2000 = vpow2.f32 %v1228_v62  ;;  %1252 = vadd.xlane.f32.xlu0 %v1251_v2  ;;  %v1265_v2 = vld [vmem:[#allocation5 + $0x10] sm:$0xff] }
 0x2e0   : > { %1828 = vmatmul.msk.bf16.vlgmr.msra.gmra.mxu2 %vm758_vm3, %v1294_v0 }
 0x2e2   : > { %v1215_v3 = vpop.permute.xlu0 %1214 }
 0x2e3   : > { %v1224_v4 = vsub.f32 %v2703_v58, %v1215_v3 }
 0x2e5   : > { %v2001_v5 = vpop.eup %2000  ;;  %v1230_v6 = vmul.f32 1.442695, %v1224_v4 }
 0x2e6   : > { %v1292_v63 = vpack.c.bf16 %v2001_v5, %v2001_v5  ;;  %v1245_v19 = vsel %vm758_vm3, %v2001_v5, 0.0 }
 0x2e7   : > { %2002 = vpow2.f32 %v1230_v6 }
 0x2e8   : > { %1826 = vmatmul.msk.bf16.vlgmr.msra.gmra.mxu0 %vm758_vm3, %v1292_v63  ;;  %2004 = vpow2.f32 %v1200_v60  ;;  %v1264_v60 = vld [vmem:[#allocation5 + $0x8] sm:$0xff] }
 0x2ea   : > { %v1205_v7 = vpop.permute.xlu1 %1204 }
 0x2eb   : > { %v1222_v8 = vsub.f32 %v2719_v1, %v1205_v7  ;;  %v1194_v1 = vmul.f32 1.442695, %v1190_v30 }
 0x2ed   : > { %v2003_v9 = vpop.eup %2002  ;;  %v1226_v10 = vmul.f32 1.442695, %v1222_v8 }
 0x2ee   : > { %v1293_v13 = vpack.c.bf16 %v2003_v9, %v2003_v9  ;;  %v1248_v15 = vsel %vm758_vm3, %v2003_v9, 0.0  ;;  %v2005_v58 = vpop.eup %2004 }
 0x2ef   : > { %2006 = vpow2.f32 %v1226_v10  ;;  %1249 = vadd.xlane.f32.xlu2 %v1248_v15  ;;  %v1241_v20 = vmul.f32 %v2005_v58, %v1237_v32 }
 0x2f0   : > { %1827 = vmatmul.msk.bf16.vlgmr.msra.gmra.mxu1 %vm758_vm3, %v1293_v13  ;;  %2008 = vpow2.f32 %v1194_v1 }
 0x2f1   : > { %2010 = vpow2.f32 %v1198_v22 }
 0x2f2   : > { %2012 = vpow2.f32 %v1196_v24 }
 0x2f3   : > { %1284 = vperm.xlu0 %1992, %v2005_v58  }
 0x2f5   : > { %v2007_v21 = vpop.eup %2006 }
 0x2f6   : > { %v1242_v26 = vsel %vm758_vm3, %v2007_v21, 0.0  ;;  %v1291_v29 = vpack.c.bf16 %v2007_v21, %v2007_v21  ;;  %v2009_v25 = vpop.eup %2008 }
 0x2f7   : > { %1246 = vadd.xlane.f32.xlu2 %v1245_v19  ;;  %1243 = vadd.xlane.f32.xlu1 %v1242_v26  ;;  %v2011_v28 = vpop.eup %2010  ;;  %v1238_v41 = vmul.f32 %v2009_v25, %v1234_v38 }
 0x2f8   : > { %1825 = vmatmul.msk.bf16.vlgmr.msrb.gmra.mxu3 %vm758_vm3, %v1291_v29  ;;  %v2013_v31 = vpop.eup %2012  ;;  %v1240_v14 = vmul.f32 %v2011_v28, %v1236_v11 }
 0x2f9   : > { %v1239_v40 = vmul.f32 %v2013_v31, %v1235_v37 }
 0x30f   : > { %1269 = vperm.xlu2 %1993, %v2009_v25  }
 0x310   : > { %1279 = vperm.xlu1 %1991, %v2011_v28  }
 0x318   : > { %1274 = vperm.xlu1 %1991, %v2013_v31  }
 0x352   : > { %v1253_v27 = vpop.xlane.xlu0 %1252 }
 0x353   : > { %v1257_v30 = vadd.f32 %v1253_v27, %v1241_v20 }
 0x355   : > { %1262 = vst.msk [vmem:[#allocation4 + $0x18] sm:$0xff] %vm749_vm4, %v1257_v30 }
 0x35c   : > { %v1394_v49 = vld [vmem:[#allocation4 + $0x18] sm:$0xff] }
 0x362   : > { %v1250_v17 = vpop.xlane.xlu2 %1249 }
 0x363   : > { %v1256_v33 = vadd.f32 %v1250_v17, %v1240_v14  ;;  %v1368_v34 = vpop.f32.mrf.mxu2 }
 0x365   : > { %1261 = vst.msk [vmem:[#allocation4 + $0x10] sm:$0xff] %vm749_vm4, %v1256_v33  ;;  %v1285_v16 = vpop.permute.xlu0 %1284  ;;  %v1330_v18 = vpop.f32.mrf.mxu0 }
 0x366   : > { %v1290_v35 = vmul.f32 %v1285_v16, %v1266_v12 }
 0x368   : > { %v1375_v39 = vadd.f32 %v1368_v34, %v1290_v35 }
 0x36a   : > { %1379 = vst.msk [vmem:[#allocation5 + $0x18] sm:$0xff] %vm758_vm3, %v1375_v39  ;;  %v1247_v42 = vpop.xlane.xlu2 %1246  ;;  %v1244_v43 = vpop.xlane.xlu1 %1243 }
 0x36b   : > { %v1255_v23 = vadd.f32 %v1247_v42, %v1239_v40  ;;  %v1254_v44 = vadd.f32 %v1244_v43, %v1238_v41  ;;  %v1370_v45 = vpop.f32.mrf.mxu2 }
 0x36c   : > { %v1393_v46 = vld [vmem:[#allocation4 + $0x10] sm:$0xff] }
 0x36d   : > { %1260 = vst.msk [vmem:[#allocation4 + $0x8] sm:$0xff] %vm749_vm4, %v1255_v23  ;;  %v1332_v47 = vpop.f32.mrf.mxu0  ;;  %v1349_v48 = vpop.f32.mrf.mxu1  ;;  %2014 = vrcp.f32 %v1393_v46 }
 0x36e   : > { %1259 = vst.msk [vmem:[#allocation4] sm:$0xff] %vm749_vm4, %v1254_v44  ;;  %2016 = vrcp.f32 %v1394_v49 }
 0x371   : > { %v1390_v22 = vld [vmem:[#allocation5 + $0x18] sm:$0xff] }
 0x372   : > { %v1270_v55 = vpop.permute.xlu2 %1269 }
 0x373   : > { %v2015_v50 = vpop.eup %2014  ;;  %v1287_v56 = vmul.f32 %v1270_v55, %v1263_v54 }
 0x374   : > { %1411 = vperm.xlu2 %1993, %v2015_v50   ;;  %v2017_v57 = vpop.eup %2016  ;;  %v1392_v61 = vld [vmem:[#allocation4 + $0x8] sm:$0xff] }
 0x375   : > { %v1351_v51 = vpop.f32.mrf.mxu1  ;;  %v1391_v52 = vld [vmem:[#allocation4] sm:$0xff] }
 0x376   : > { %2018 = vrcp.f32 %v1391_v52 }
 0x377   : > { %2020 = vrcp.f32 %v1392_v61 }
 0x37b   : > { %v1311_v59 = vpop.f32.mrf.mxu3 }
 0x37c   : > { %v2019_v62 = vpop.eup %2018  ;;  %v1372_v0 = vadd.f32 %v1311_v59, %v1287_v56  ;;  %1416 = vperm.xlu2 %1993, %v2017_v57  }
 0x37d   : > { %1401 = vperm.xlu1 %1991, %v2019_v62   ;;  %v2021_v6 = vpop.eup %2020 }
 0x37e   : > { %1376 = vst.msk [vmem:[#allocation5] sm:$0xff] %vm758_vm3, %v1372_v0 }
 0x382   : > { %v1280_v3 = vpop.permute.xlu1 %1279 }
 0x383   : > { %v1289_v4 = vmul.f32 %v1280_v3, %v1265_v2  ;;  %v1313_v5 = vpop.f32.mrf.mxu3 }
 0x385   : > { %v1374_v63 = vadd.f32 %v1349_v48, %v1289_v4  ;;  %1406 = vperm.xlu1 %1991, %v2021_v6   ;;  %v1387_v21 = vld [vmem:[#allocation5] sm:$0xff] }
 0x387   : > { %1378 = vst.msk [vmem:[#allocation5 + $0x10] sm:$0xff] %vm758_vm3, %v1374_v63 }
 0x38a   : > { %v1275_v7 = vpop.permute.xlu1 %1274 }
 0x38b   : > { %v1288_v8 = vmul.f32 %v1275_v7, %v1264_v60 }
 0x38d   : > { %v1373_v9 = vadd.f32 %v1330_v18, %v1288_v8 }
 0x38e   : > { %v1389_v13 = vld [vmem:[#allocation5 + $0x10] sm:$0xff] }
 0x38f   : > { %1377 = vst.msk [vmem:[#allocation5 + $0x8] sm:$0xff] %vm758_vm3, %v1373_v9 }
 0x396   : > { %v1388_v32 = vld [vmem:[#allocation5 + $0x8] sm:$0xff] }
 0x3ce   : > { %v1412_v10 = vpop.permute.xlu2 %1411 }
 0x3cf   : > { %v1421_v15 = vmul.f32 %v1412_v10, %v1389_v13 }
 0x3d1   : > { %v1423_v29 = vrot.slane %v1421_v15, 4 }
 0x3d6   : > { %v1417_v26 = vpop.permute.xlu2 %1416 }
 0x3d7   : > { %v1422_v24 = vmul.f32 %v1417_v26, %v1390_v22 }
 0x3d9   : > { %v1435_v27 = vrot.slane %v1422_v24, 4 }
 0x3ef   : > { %v1402_v58 = vpop.permute.xlu1 %1401 }
 0x3f0   : > { %v1419_v19 = vmul.f32 %v1402_v58, %v1387_v21 }
 0x3f2   : > { %v1425_v1 = vrot.slane %v1419_v19, 4  ;;  %v1424_v25 = vsel %vm630_vm1, %v1423_v29, %v1419_v19 }
 0x3f3   : > { %v1430_v31 = vperm.slane %v1424_v25, %v2605_v36  ;;  %v1849_v25 = vld [vmem:[#allocation17 + $0x8] sm:$0xff] }
 0x3f4   : > { %v1426_v28 = vsel %vm630_vm1, %v1421_v15, %v1425_v1  ;;  %1580 = vmatpush.bf16.msra.mxu3 %v1849_v25 }
 0x3f5   : > { %v1434_v11 = vperm.slane %v1426_v28, %v2605_v36  ;;  %v1449_v33 = vrot.slane %v1430_v31, 4  ;;  %v1848_v28 = vld [vmem:[#allocation17] sm:$0xff] }
 0x3f7   : > { %v1407_v20 = vpop.permute.xlu1 %1406  ;;  %v1461_v16 = vrot.slane %v1434_v11, 4 }
 0x3f8   : > { %v1420_v30 = vmul.f32 %v1407_v20, %v1388_v32  ;;  %1581 = vmatpush.bf16.msra.mxu3 %v1848_v28 }
 0x3fa   : > { %v1436_v14 = vsel %vm630_vm1, %v1435_v27, %v1420_v30  ;;  %v1437_v17 = vrot.slane %v1420_v30, 4 }
 0x3fb   : > { %v1442_v34 = vperm.slane %v1436_v14, %v2605_v36  ;;  %v1997_v14 = vld [vmem:[%s2988_s27] ss:$0 sm:$0xff] }
 0x3fc   : > { %v1438_v12 = vsel %vm630_vm1, %v1422_v24, %v1437_v17 }
 0x3fd   : > { %v1446_v18 = vperm.slane %v1438_v12, %v2605_v36  ;;  %v1447_v35 = vrot.slane %v1442_v34, 4  ;;  %v1450_v37 = vsel %vm630_vm1, %v1442_v34, %v1449_v33 }
 0x3fe   : > { %v1458_v38 = vperm.slane %v1450_v37, %v2617_v53 }
 0x3ff   : > { %v1448_v39 = vsel %vm630_vm1, %v1447_v35, %v1430_v31  ;;  %v1459_v40 = vrot.slane %v1446_v18, 4  ;;  %v1462_v41 = vsel %vm630_vm1, %v1446_v18, %v1461_v16 }
 0x400   : > { %v1454_v42 = vperm.slane %v1448_v39, %v2617_v53  ;;  %v1470_v43 = vperm.slane %v1462_v41, %v2617_v53  ;;  %v1473_v23 = vrot.slane %v1458_v38, 4 }
 0x401   : > { %v1460_v44 = vsel %vm630_vm1, %v1459_v40, %v1434_v11 }
 0x402   : > { %v1466_v45 = vperm.slane %v1460_v44, %v2617_v53  ;;  %v1471_v46 = vrot.slane %v1454_v42, 4  ;;  %v1474_v47 = vsel %vm630_vm1, 0.0, %v1473_v23  ;;  %v1477_v48 = vrot.slane %v1470_v43, 4 }
 0x403   : > { %v1479_v49 = vsel %vm630_vm1, %v1473_v23, %v1454_v42  ;;  %v1484_v50 = vrot.slane %v1474_v47, 4 }
 0x404   : > { %v1478_v51 = vsel %vm630_vm1, 0.0, %v1477_v48  ;;  %v1472_v52 = vsel %vm630_vm1, 0.0, %v1471_v46  ;;  %v1475_v54 = vrot.slane %v1466_v45, 4  ;;  %v1483_v55 = vperm.slane %v1479_v49, %v2605_v36 }
 0x405   : > { %v1495_v56 = vrot.slane %v1478_v51, 4  ;;  %v1485_v57 = vsel %vm630_vm1, %v1484_v50, %v1472_v52  ;;  %v1490_v59 = vsel %vm630_vm1, %v1477_v48, %v1466_v45 }
 0x406   : > { %v1476_v61 = vsel %vm630_vm1, 0.0, %v1475_v54  ;;  %v1489_v62 = vperm.slane %v1485_v57, %v2605_v36  ;;  %v1494_v0 = vperm.slane %v1490_v59, %v2605_v36  ;;  %v1503_v2 = vrot.slane %v1483_v55, 4 }
 0x407   : > { %v1496_v3 = vsel %vm630_vm1, %v1495_v56, %v1476_v61 }
 0x408   : > { %v1500_v4 = vperm.slane %v1496_v3, %v2605_v36  ;;  %v1504_v5 = vsel %vm630_vm1, %v1489_v62, %v1503_v2  ;;  %v1515_v6 = vrot.slane %v1494_v0, 4  ;;  %v1501_v63 = vrot.slane %v1489_v62, 4 }
 0x409   : > { %v1512_v60 = vperm.slane %v1504_v5, %v2617_v53 }
 0x40a   : > { %v1516_v7 = vsel %vm630_vm1, %v1500_v4, %v1515_v6  ;;  %v1502_v8 = vsel %vm630_vm1, %v1501_v63, %v1483_v55  ;;  %v1513_v9 = vrot.slane %v1500_v4, 4 }
 0x40b   : > { %v1524_v10 = vperm.slane %v1516_v7, %v2617_v53  ;;  %v1531_v13 = vrot.slane %v1512_v60, 4  ;;  %v1508_v15 = vperm.slane %v1502_v8, %v2617_v53 }
 0x40c   : > { %v1514_v58 = vsel %vm630_vm1, %v1513_v9, %v1494_v0 }
 0x40d   : > { %v1532_v36 = vsel %vm630_vm1, %v1524_v10, %v1531_v13  ;;  %v1529_v21 = vrot.slane %v1524_v10, 4  ;;  %v1520_v19 = vperm.slane %v1514_v58, %v2617_v53  ;;  %v1527_v26 = vrot.slane %v1508_v15, 4 }
 0x40e   : > { %1542 = vrot.lane.b32.xlu1 %v1532_v36, %s2342_s10 }
 0x40f   : > { %v1530_v29 = vsel %vm630_vm1, %v1529_v21, %v1512_v60  ;;  %v1525_v1 = vrot.slane %v1520_v19, 4  ;;  %v1528_v22 = vsel %vm630_vm1, %v1520_v19, %v1527_v26 }
 0x410   : > { %1538 = vrot.lane.b32.xlu2 %v1530_v29, %s2343_s12  ;;  %1534 = vrot.lane.b32.xlu0 %v1528_v22, %s2344_s28 }
 0x411   : > { %v1526_v24 = vsel %vm630_vm1, %v1525_v1, %v1508_v15 }
 0x46a   : > { %v1539_v31 = vpop.permute.xlu2 %1538 }
 0x480   : > { %v1543_v20 = vpop.permute.xlu1 %1542 }
 0x482   : > { %v1535_v53 = vpop.permute.xlu0 %1534 }
 0x483   : > { %v1545_v32 = vsel %vm758_vm3, %v1526_v24, %v1535_v53 }
 0x484   : > { %v1547_v27 = vsel %vm1546_vm6, %v1545_v32, %v1539_v31 }
 0x485   : > { %v1549_v30 = vsel %vm1548_vm7, %v1547_v27, %v1543_v20 }
 0x486   : > { %v1550_v11 = vpack.c.bf16 %v1549_v30, %v1549_v30 }
 0x488   : > { %1837 = vmatmul.msk.bf16.vlgmr.msra.gmra.mxu3 %vm602_vm0, %v1550_v11 }
 0x50b   : > { %v1583_v17 = vpop.f32.mrf.mxu3 }
 0x50c   : > { %v1584_v33 = vadd.f32 %v1997_v14, %v1583_v17 }
 0x50e   : > { %1587 = vst.msk [vmem:[%s574_s24] sm:$0xff] %vm602_vm0, %v1584_v33 }
 0x50f   : > { %2259 = shalt.err (!%p2256_p13)
}
 0x510   : > { %1872 = dma.vmem_to_hbm [thread:$0]  (%p2493_p2), %s1603_s23, 128, %s1605_s14, %s1589_s29  }
 0x513   : > { %v1585_v34 = vpop.f32.mrf.mxu3 }
 0x514 PF: > { %s2989_s15 = sld [smem:[#allocation24_spill]]  ;;  %p1898_p0 = pnand %p1778_p6, %p2500_p7 }
 0x515   : > { %s2991_s10 = sld [smem:[#allocation26_spill]] }
 0x516   : > { %p1899_p4 = pneg %p1898_p0 }
 0x51a   : > { %s1616_s12 = sand.u32 1, %s2989_s15  }
 0x51b   : > { %s1617_s28 = scalar_lea.sflag [#allocation8], %s1616_s12 }
 0x51c   : > { %2301 = dma.done.wait (%p1899_p4), %s1617_s28, 128  }
 0x51d   : > { %2303 = vsyncadd (%p1899_p4), %s1617_s28, 4294967168  ;;  %s32_s22 = sadd.s32 1, %s2991_s10   ;;  %s2992_s21 = sld [smem:[#allocation29_spill]] }
 0x51e   : > { %p29_p9 = scmp.ge.s32.totalorder %s32_s22, 4   ;;  %s2993_s20 = sld [smem:[#allocation25_spill]] }
 0x51f   : > { %s2994_s26 = sld [smem:[#allocation27_spill]]  ;;  %s2995_s17 = smov %s2310_s18 }
 0x520   : > { %s2996_s18 = smov %s2314_s19 }
 0x521   :  { %31 = sbr.rel (!%p29_p9) target bundleno = 18 (0x12), region = 157 }
 0x523   : > { %s2997_s19 = smov %s2992_s21 }
 0x525   : > { %s2998_s21 = smov %s2994_s26 }
 0x526   :  { %1623 = vsyncpa [#allocation7], 1 }
 0x527   :  { %1625 = vsyncpa [#allocation7 + $0x1], 1 }
 0x528   :  { %1626 = vsyncpa [#allocation10], 1 }
 0x529   :  { %1628 = vsyncpa [#allocation10 + $0x1], 1 }
 0x52a   :  { %1629 = vsyncpa [#allocation13], 1 }
 0x52b   :  { %1630 = vsyncpa [#allocation16], 1 }
 0x52c   :  { %1631 = vsyncpa [#allocation8], 1 }
 0x52d   :  { %1633 = vsyncpa [#allocation8 + $0x1], 1 }

</bundles_post_ra>
